<compile_context>
chip_gen: v6e
topology: v6e:2x2x1
jax: 0.10.0
libtpu: 0.0.40
codegen_flags: <defaults>
</compile_context>

<pallas_src>
import math

import numpy as np
import jax
import jax.numpy as jnp
from jax.experimental import pallas as pl
from jax.experimental.pallas import tpu as pltpu

# ---- model hyper-parameters (small, consistent with the module) ----
B = 2          # batch
T = 8          # target sequence length
S = 8          # source (encoder) sequence length
HID = 32       # hid_dim
N_HEADS = 4    # n_heads
HEAD_DIM = HID // N_HEADS
PF = 64        # pf_dim
EPS = 1e-5
SCALE = math.sqrt(HEAD_DIM)

# MXU operand dtype.  f32 keeps the test numerics tight at these tiny shapes;
# set to jnp.bfloat16 on v6e/v7x once HID/PF grow (bf16 operands + f32
# accumulation is the native fast path there).
MXU_DTYPE = jnp.float32


def decoder_layer_kernel(
    trg_ref, enc_ref, bias_t_ref, bias_s_ref, hmask_t_ref, hmask_s_ref,
    sa_wqkv_ref, sa_bqkv_ref, sa_wo_ref, sa_bo_ref,
    ea_wq_ref, ea_bq_ref, ea_wkv_ref, ea_bkv_ref, ea_wo_ref, ea_bo_ref,
    ff_w1_ref, ff_b1_ref, ff_w2_ref, ff_b2_ref,
    ln1_g_ref, ln1_b_ref, ln2_g_ref, ln2_b_ref, ln3_g_ref, ln3_b_ref,
    out_ref, attn_ref,
):
    trg = trg_ref[...]          # (B*T, HID)
    enc = enc_ref[...]          # (B*S, HID)

    def layer_norm(x, g, b):
        mu = jnp.mean(x, axis=-1, keepdims=True)
        xc = x - mu
        var = jnp.mean(xc * xc, axis=-1, keepdims=True)
        return xc * jax.lax.rsqrt(var + EPS) * g + b

    def mm(a, w_ref, b_ref):
        # projection matmul with bias; operands cast to the MXU dtype knob
        return (jnp.dot(a.astype(MXU_DTYPE), w_ref[...].astype(MXU_DTYPE),
                        preferred_element_type=jnp.float32) + b_ref[...])

    def head_block_diag(x3, hmask):
        # (B, Lk, HID) -> (B, N_HEADS*Lk, HID); row j = h*Lk + k keeps only
        # head h's HEAD_DIM columns of x3[:, k, :].  Packs all heads into a
        # single full-width MXU contraction (no per-head matmuls, no
        # head-axis relayout).
        rep = jnp.concatenate([x3] * N_HEADS, axis=1)
        return rep * hmask

    def attention(q2d, k3, v3, bias, hmask, Lq, Lk, exact_probs):
        # q2d: (B*Lq, HID), already pre-scaled by 1/sqrt(HEAD_DIM) (folded
        #      into Wq/bq at setup).
        # k3/v3: (B, Lk, HID).  bias: (B, Lq, N_HEADS*Lk) additive mask.
        q3 = q2d.reshape(B, Lq, HID)
        k_bd = head_block_diag(k3, hmask)                 # (B, H*Lk, HID)
        v_bd = head_block_diag(v3, hmask)                 # (B, H*Lk, HID)

        # energy[b, q, h*Lk + k] = <Q_h[b,q,:], K_h[b,k,:]> / sqrt(d)
        energy = jnp.einsum('bqc,bjc->bqj',
                            q3.astype(MXU_DTYPE), k_bd.astype(MXU_DTYPE),
                            preferred_element_type=jnp.float32) + bias

        # per-head softmax over each segment of Lk lanes
        parts = []
        for h in range(N_HEADS):
            eh = energy[:, :, h * Lk:(h + 1) * Lk]
            ph = jnp.exp(eh - jnp.max(eh, axis=-1, keepdims=True))
            sh = jnp.sum(ph, axis=-1, keepdims=True)
            if exact_probs:
                parts.append(ph / sh)                      # exact (returned attn)
            else:
                parts.append(ph * pl.reciprocal(sh, approx=True))  # EUP path
        probs = jnp.concatenate(parts, axis=-1)            # (B, Lq, H*Lk)

        # ctx comes out already head-merged: column c only picks up its own
        # head's keys because v_bd is block-diagonal.
        ctx = jnp.einsum('bqj,bjc->bqc',
                         probs.astype(MXU_DTYPE), v_bd.astype(MXU_DTYPE),
                         preferred_element_type=jnp.float32)
        return ctx.reshape(B * Lq, HID), probs

    # ---- self attention (fused QKV projection) + residual + LayerNorm ----
    qkv = mm(trg, sa_wqkv_ref, sa_bqkv_ref)                        # (B*T, 3*HID)
    sa_ctx, _ = attention(
        qkv[:, :HID],
        qkv[:, HID:2 * HID].reshape(B, T, HID),
        qkv[:, 2 * HID:].reshape(B, T, HID),
        bias_t_ref[...], hmask_t_ref[...], T, T, exact_probs=False)
    sa_out = mm(sa_ctx, sa_wo_ref, sa_bo_ref)
    x = layer_norm(trg + sa_out, ln1_g_ref[...], ln1_b_ref[...])

    # ---- encoder (cross) attention (fused KV projection) + residual + LN --
    q2 = mm(x, ea_wq_ref, ea_bq_ref)
    kv = mm(enc, ea_wkv_ref, ea_bkv_ref)                           # (B*S, 2*HID)
    ea_ctx, probs = attention(
        q2,
        kv[:, :HID].reshape(B, S, HID),
        kv[:, HID:].reshape(B, S, HID),
        bias_s_ref[...], hmask_s_ref[...], T, S, exact_probs=True)
    ea_out = mm(ea_ctx, ea_wo_ref, ea_bo_ref)
    x = layer_norm(x + ea_out, ln2_g_ref[...], ln2_b_ref[...])

    # single coalesced write of the cross-attention weights (packed heads)
    attn_ref[...] = probs                                          # (B, T, H*S)

    # ---- positionwise feedforward + residual + LayerNorm ----
    hmid = jnp.maximum(mm(x, ff_w1_ref, ff_b1_ref), 0.0)
    ff = mm(hmid, ff_w2_ref, ff_b2_ref)
    x = layer_norm(x + ff, ln3_g_ref[...], ln3_b_ref[...])
    out_ref[...] = x


def prepare_decoder_params(p):
    """One-time (setup) parameter fusion -> kernel weight dict.

    Done ONCE at parameter-build time, not per forward call: QKV / KV weight
    packing, folding 1/sqrt(head_dim) into Wq/bq, and the constant
    block-diagonal head-selector masks.
    """
    inv_scale = jnp.float32(1.0 / SCALE)

    def head_selector(Lk):
        # hmask[h*Lk + k, c] = 1.0 iff column c belongs to head h
        row_head = np.repeat(np.arange(N_HEADS), Lk)[:, None]
        col_head = (np.arange(HID) // HEAD_DIM)[None, :]
        return jnp.asarray((row_head == col_head).astype(np.float32))

    return dict(
        sa_wqkv=jnp.concatenate(
            [p["sa_wq"] * inv_scale, p["sa_wk"], p["sa_wv"]], axis=1),
        sa_bqkv=jnp.concatenate(
            [p["sa_bq"] * inv_scale, p["sa_bk"], p["sa_bv"]], axis=1),
        sa_wo=p["sa_wo"], sa_bo=p["sa_bo"],
        ea_wq=p["ea_wq"] * inv_scale, ea_bq=p["ea_bq"] * inv_scale,
        ea_wkv=jnp.concatenate([p["ea_wk"], p["ea_wv"]], axis=1),
        ea_bkv=jnp.concatenate([p["ea_bk"], p["ea_bv"]], axis=1),
        ea_wo=p["ea_wo"], ea_bo=p["ea_bo"],
        ff_w1=p["ff_w1"], ff_b1=p["ff_b1"],
        ff_w2=p["ff_w2"], ff_b2=p["ff_b2"],
        ln1_g=p["ln1_g"], ln1_b=p["ln1_b"],
        ln2_g=p["ln2_g"], ln2_b=p["ln2_b"],
        ln3_g=p["ln3_g"], ln3_b=p["ln3_b"],
        hmask_t=head_selector(T), hmask_s=head_selector(S),
    )


def decoder_layer(trg, enc_src, trg_mask, src_mask, fp):
    """fp: fused params from prepare_decoder_params (built once at setup)."""
    # Fold batch into the matmul M dimension; single kernel invocation.
    trg2d = trg.reshape(B * T, HID)
    enc2d = enc_src.reshape(B * S, HID)

    # Additive mask bias, pre-expanded to the packed-head layout
    # (B, Lq, N_HEADS*Lk): the kernel only does one add per attention.
    NEG = jnp.float32(-1e10)
    tmask = jnp.broadcast_to(trg_mask, (B, 1, T, T))[:, 0]          # (B, T, T)
    smask = jnp.broadcast_to(src_mask, (B, 1, T, S))[:, 0]          # (B, T, S)
    bias_t = jnp.tile(jnp.where(tmask == 0.0, NEG, 0.0), (1, 1, N_HEADS))
    bias_s = jnp.tile(jnp.where(smask == 0.0, NEG, 0.0), (1, 1, N_HEADS))

    args = (
        trg2d, enc2d, bias_t, bias_s, fp["hmask_t"], fp["hmask_s"],
        fp["sa_wqkv"], fp["sa_bqkv"], fp["sa_wo"], fp["sa_bo"],
        fp["ea_wq"], fp["ea_bq"], fp["ea_wkv"], fp["ea_bkv"],
        fp["ea_wo"], fp["ea_bo"],
        fp["ff_w1"], fp["ff_b1"], fp["ff_w2"], fp["ff_b2"],
        fp["ln1_g"], fp["ln1_b"], fp["ln2_g"], fp["ln2_b"],
        fp["ln3_g"], fp["ln3_b"],
    )

    # Advisory cost estimate (matmul flops dominate).
    flops = 2 * (
        (B * T) * HID * (3 * HID)                       # fused QKV proj
        + 3 * (B * T) * HID * HID                       # sa_out, ea_q, ea_out
        + (B * S) * HID * (2 * HID)                     # fused KV proj
        + 2 * (B * T) * HID * PF                        # feedforward
        + 2 * B * T * HID * (N_HEADS * T)               # self-attn energy+ctx
        + 2 * B * T * HID * (N_HEADS * S))              # cross-attn energy+ctx
    transcendentals = B * T * N_HEADS * (T + S) + 3 * B * T + B * T * N_HEADS
    bytes_accessed = 4 * (sum(int(a.size) for a in args)
                          + (B * T) * HID + B * T * (N_HEADS * S))

    vmem_spec = pl.BlockSpec(memory_space=pltpu.MemorySpace.VMEM)
    out2d, attn_packed = pl.pallas_call(
        decoder_layer_kernel,
        out_shape=(
            jax.ShapeDtypeStruct((B * T, HID), jnp.float32),
            jax.ShapeDtypeStruct((B, T, N_HEADS * S), jnp.float32),
        ),
        in_specs=[vmem_spec] * len(args),
        out_specs=(vmem_spec, vmem_spec),
        compiler_params=pltpu.CompilerParams(vmem_limit_bytes=4 * 1024 * 1024),
        cost_estimate=pl.CostEstimate(flops=flops,
                                      transcendentals=transcendentals,
                                      bytes_accessed=bytes_accessed),
    )(*args)

    # Un-pack heads outside the kernel (cheap XLA reshape/transpose).
    attn = attn_packed.reshape(B, T, N_HEADS, S).transpose(0, 2, 1, 3)
    return out2d.reshape(B, T, HID), attn


decoder_layer_jit = jax.jit(decoder_layer)


# ------------------------- pure-JAX reference ------------------------------
def ref_mha(xq, xk, xv, mask, wq, bq, wk, bk, wv, bv, wo, bo):
    Bq, Tq, _ = xq.shape
    Tk = xk.shape[1]
    Q = xq @ wq + bq
    K = xk @ wk + bk
    V = xv @ wv + bv
    Qh = Q.reshape(Bq, Tq, N_HEADS, HEAD_DIM).transpose(0, 2, 1, 3)
    Kh = K.reshape(Bq, Tk, N_HEADS, HEAD_DIM).transpose(0, 2, 1, 3)
    Vh = V.reshape(Bq, Tk, N_HEADS, HEAD_DIM).transpose(0, 2, 1, 3)
    energy = jnp.einsum("bhqd,bhkd->bhqk", Qh, Kh) / SCALE
    energy = jnp.where(mask == 0.0, -1e10, energy)
    attn = jax.nn.softmax(energy, axis=-1)
    out = jnp.einsum("bhqk,bhkd->bhqd", attn, Vh)
    out = out.transpose(0, 2, 1, 3).reshape(Bq, Tq, HID)
    return out @ wo + bo, attn


def ref_ln(x, g, b):
    mu = jnp.mean(x, axis=-1, keepdims=True)
    var = jnp.mean((x - mu) ** 2, axis=-1, keepdims=True)
    return (x - mu) / jnp.sqrt(var + EPS) * g + b


def ref_decoder(trg, enc_src, trg_mask, src_mask, p):
    sa, _ = ref_mha(trg, trg, trg, trg_mask,
                    p["sa_wq"], p["sa_bq"], p["sa_wk"], p["sa_bk"],
                    p["sa_wv"], p["sa_bv"], p["sa_wo"], p["sa_bo"])
    x = ref_ln(trg + sa, p["ln1_g"], p["ln1_b"])
    ea, attn = ref_mha(x, enc_src, enc_src, src_mask,
                       p["ea_wq"], p["ea_bq"], p["ea_wk"], p["ea_bk"],
                       p["ea_wv"], p["ea_bv"], p["ea_wo"], p["ea_bo"])
    x = ref_ln(x + ea, p["ln2_g"], p["ln2_b"])
    ff = jnp.maximum(x @ p["ff_w1"] + p["ff_b1"], 0.0) @ p["ff_w2"] + p["ff_b2"]
    x = ref_ln(x + ff, p["ln3_g"], p["ln3_b"])
    return x, attn


# ------------------------------- main ---------------------------------------
if __name__ == "__main__":
    key = jax.random.PRNGKey(0)
    ks = iter(jax.random.split(key, 64))

    def mat(shape, scale):
        return jax.random.normal(next(ks), shape, jnp.float32) * scale

    params = {}
    for prefix in ("sa", "ea"):
        for name in ("wq", "wk", "wv", "wo"):
            params[f"{prefix}_{name}"] = mat((HID, HID), 1.0 / math.sqrt(HID))
        for name in ("bq", "bk", "bv", "bo"):
            params[f"{prefix}_{name}"] = mat((1, HID), 0.02)
    params["ff_w1"] = mat((HID, PF), 1.0 / math.sqrt(HID))
    params["ff_b1"] = mat((1, PF), 0.02)
    params["ff_w2"] = mat((PF, HID), 1.0 / math.sqrt(PF))
    params["ff_b2"] = mat((1, HID), 0.02)
    for i in (1, 2, 3):
        params[f"ln{i}_g"] = jnp.ones((1, HID), jnp.float32)
        params[f"ln{i}_b"] = jnp.zeros((1, HID), jnp.float32)

    # one-time setup-time parameter fusion (perf-feedback item)
    fused = prepare_decoder_params(params)

    trg = jax.random.normal(next(ks), (B, T, HID), jnp.float32)
    enc_src = jax.random.normal(next(ks), (B, S, HID), jnp.float32)
    # causal target mask [B,1,T,T]; source padding mask [B,1,1,S]
    trg_mask = jnp.broadcast_to(
        jnp.tril(jnp.ones((T, T), jnp.float32))[None, None], (B, 1, T, T))
    src_mask = jnp.ones((B, 1, 1, S), jnp.float32)
    src_mask = src_mask.at[1, 0, 0, -2:].set(0.0)

    out, attn = decoder_layer_jit(trg, enc_src, trg_mask, src_mask, fused)
    out = jax.block_until_ready(out)
    attn = jax.block_until_ready(attn)

    ref_out, ref_attn = ref_decoder(trg, enc_src, trg_mask, src_mask, params)
    assert out.shape == (B, T, HID) and attn.shape == (B, N_HEADS, T, S)
    # Returned attention uses an exact divide -> tight match, rows sum to 1.
    assert jnp.allclose(attn, ref_attn, atol=5e-4, rtol=5e-4)
    assert jnp.allclose(attn.sum(-1), 1.0, atol=1e-5)
    # Output tolerance absorbs the approximate EUP reciprocal used only on the
    # self-attention context path.
    assert jnp.allclose(out, ref_out, atol=5e-3, rtol=5e-3)

    print("KERNEL_OK")
</pallas_src>

<mosaic_0001>
module attributes {stable_mosaic.version = 11 : i64} {
  func.func @decoder_layer_kernel(%arg0: memref<16x32xf32, #tpu.memory_space<vmem>>, %arg1: memref<16x32xf32, #tpu.memory_space<vmem>>, %arg2: memref<2x8x32xf32, #tpu.memory_space<vmem>>, %arg3: memref<2x8x32xf32, #tpu.memory_space<vmem>>, %arg4: memref<32x32xf32, #tpu.memory_space<vmem>>, %arg5: memref<32x32xf32, #tpu.memory_space<vmem>>, %arg6: memref<32x96xf32, #tpu.memory_space<vmem>>, %arg7: memref<1x96xf32, #tpu.memory_space<vmem>>, %arg8: memref<32x32xf32, #tpu.memory_space<vmem>>, %arg9: memref<1x32xf32, #tpu.memory_space<vmem>>, %arg10: memref<32x32xf32, #tpu.memory_space<vmem>>, %arg11: memref<1x32xf32, #tpu.memory_space<vmem>>, %arg12: memref<32x64xf32, #tpu.memory_space<vmem>>, %arg13: memref<1x64xf32, #tpu.memory_space<vmem>>, %arg14: memref<32x32xf32, #tpu.memory_space<vmem>>, %arg15: memref<1x32xf32, #tpu.memory_space<vmem>>, %arg16: memref<32x64xf32, #tpu.memory_space<vmem>>, %arg17: memref<1x64xf32, #tpu.memory_space<vmem>>, %arg18: memref<64x32xf32, #tpu.memory_space<vmem>>, %arg19: memref<1x32xf32, #tpu.memory_space<vmem>>, %arg20: memref<1x32xf32, #tpu.memory_space<vmem>>, %arg21: memref<1x32xf32, #tpu.memory_space<vmem>>, %arg22: memref<1x32xf32, #tpu.memory_space<vmem>>, %arg23: memref<1x32xf32, #tpu.memory_space<vmem>>, %arg24: memref<1x32xf32, #tpu.memory_space<vmem>>, %arg25: memref<1x32xf32, #tpu.memory_space<vmem>>, %arg26: memref<16x32xf32, #tpu.memory_space<vmem>>, %arg27: memref<2x8x32xf32, #tpu.memory_space<vmem>>) attributes {dimension_semantics = [], scalar_prefetch = 0 : i64, scratch_operands = 0 : i64, tpu.core_type = #tpu.core_type<tc>} {
    %c0 = arith.constant 0 : index
    %c0_0 = arith.constant 0 : index
    %0 = vector.load %arg0[%c0, %c0_0] : memref<16x32xf32, #tpu.memory_space<vmem>>, vector<16x32xf32>
    %c0_1 = arith.constant 0 : index
    %c0_2 = arith.constant 0 : index
    %1 = vector.load %arg1[%c0_1, %c0_2] : memref<16x32xf32, #tpu.memory_space<vmem>>, vector<16x32xf32>
    %c0_3 = arith.constant 0 : index
    %c0_4 = arith.constant 0 : index
    %2 = vector.load %arg6[%c0_3, %c0_4] : memref<32x96xf32, #tpu.memory_space<vmem>>, vector<32x96xf32>
    %cst = arith.constant dense<0.000000e+00> : vector<16x96xf32>
    %3 = tpu.matmul %0, %2, %cst {dimension_numbers = #tpu.dot_dimension_numbers<[1], [0], [0], [1], [0, 0, 1, 1], [], []>} : vector<16x32xf32>, vector<32x96xf32>, vector<16x96xf32> -> vector<16x96xf32>
    %c0_5 = arith.constant 0 : index
    %c0_6 = arith.constant 0 : index
    %4 = vector.load %arg7[%c0_5, %c0_6] : memref<1x96xf32, #tpu.memory_space<vmem>>, vector<1x96xf32>
    %5 = vector.broadcast %4 : vector<1x96xf32> to vector<16x96xf32>
    %6 = arith.addf %3, %5 : vector<16x96xf32>
    %7 = vector.extract_strided_slice %6 {offsets = [0, 0], sizes = [16, 32], strides = [1, 1]} : vector<16x96xf32> to vector<16x32xf32>
    %8 = vector.extract_strided_slice %6 {offsets = [0, 32], sizes = [16, 32], strides = [1, 1]} : vector<16x96xf32> to vector<16x32xf32>
    %9 = vector.shape_cast %8 : vector<16x32xf32> to vector<2x8x32xf32>
    %10 = vector.extract_strided_slice %6 {offsets = [0, 64], sizes = [16, 32], strides = [1, 1]} : vector<16x96xf32> to vector<16x32xf32>
    %11 = vector.shape_cast %10 : vector<16x32xf32> to vector<2x8x32xf32>
    %c0_7 = arith.constant 0 : index
    %c0_8 = arith.constant 0 : index
    %c0_9 = arith.constant 0 : index
    %12 = vector.load %arg2[%c0_7, %c0_8, %c0_9] : memref<2x8x32xf32, #tpu.memory_space<vmem>>, vector<2x8x32xf32>
    %c0_10 = arith.constant 0 : index
    %c0_11 = arith.constant 0 : index
    %13 = vector.load %arg4[%c0_10, %c0_11] : memref<32x32xf32, #tpu.memory_space<vmem>>, vector<32x32xf32>
    %14 = vector.shape_cast %7 : vector<16x32xf32> to vector<2x8x32xf32>
    %15 = tpu.concatenate %9, %9, %9, %9 in 1 : vector<2x8x32xf32>, vector<2x8x32xf32>, vector<2x8x32xf32>, vector<2x8x32xf32> -> vector<2x32x32xf32>
    %16 = vector.shape_cast %13 : vector<32x32xf32> to vector<1x32x32xf32>
    %17 = vector.broadcast %16 : vector<1x32x32xf32> to vector<2x32x32xf32>
    %18 = arith.mulf %15, %17 : vector<2x32x32xf32>
    %19 = tpu.concatenate %11, %11, %11, %11 in 1 : vector<2x8x32xf32>, vector<2x8x32xf32>, vector<2x8x32xf32>, vector<2x8x32xf32> -> vector<2x32x32xf32>
    %20 = vector.shape_cast %13 : vector<32x32xf32> to vector<1x32x32xf32>
    %21 = vector.broadcast %20 : vector<1x32x32xf32> to vector<2x32x32xf32>
    %22 = arith.mulf %19, %21 : vector<2x32x32xf32>
    "tpu.trace_start"() <{level = 10 : i32, message = "bqc,bjc->bqj"}> : () -> ()
    %cst_12 = arith.constant dense<0.000000e+00> : vector<2x8x32xf32>
    %23 = tpu.matmul %14, %18, %cst_12 {dimension_numbers = #tpu.dot_dimension_numbers<[2], [2], [1], [1], [0, 0, 0, 1, 1, 1], [0], [0]>} : vector<2x8x32xf32>, vector<2x32x32xf32>, vector<2x8x32xf32> -> vector<2x8x32xf32>
    "tpu.trace_stop"() : () -> ()
    %24 = arith.addf %23, %12 : vector<2x8x32xf32>
    %25 = vector.extract_strided_slice %24 {offsets = [0, 0, 0], sizes = [2, 8, 8], strides = [1, 1, 1]} : vector<2x8x32xf32> to vector<2x8x8xf32>
    %cst_13 = arith.constant dense<0xFF800000> : vector<2x8xf32>
    %26 = vector.multi_reduction <maximumf>, %25, %cst_13 [2] : vector<2x8x8xf32> to vector<2x8xf32>
    %27 = vector.shape_cast %26 : vector<2x8xf32> to vector<2x8x1xf32>
    %28 = vector.broadcast %27 : vector<2x8x1xf32> to vector<2x8x8xf32>
    %29 = arith.subf %25, %28 : vector<2x8x8xf32>
    %30 = math.exp %29 : vector<2x8x8xf32>
    %cst_14 = arith.constant dense<0.000000e+00> : vector<2x8xf32>
    %31 = vector.multi_reduction <add>, %30, %cst_14 [2] : vector<2x8x8xf32> to vector<2x8xf32>
    %32 = vector.shape_cast %31 : vector<2x8xf32> to vector<2x8x1xf32>
    %33 = tpu.reciprocal %32 {approx = true} : vector<2x8x1xf32> -> vector<2x8x1xf32>
    %34 = vector.broadcast %33 : vector<2x8x1xf32> to vector<2x8x8xf32>
    %35 = arith.mulf %30, %34 : vector<2x8x8xf32>
    %36 = vector.extract_strided_slice %24 {offsets = [0, 0, 8], sizes = [2, 8, 8], strides = [1, 1, 1]} : vector<2x8x32xf32> to vector<2x8x8xf32>
    %cst_15 = arith.constant dense<0xFF800000> : vector<2x8xf32>
    %37 = vector.multi_reduction <maximumf>, %36, %cst_15 [2] : vector<2x8x8xf32> to vector<2x8xf32>
    %38 = vector.shape_cast %37 : vector<2x8xf32> to vector<2x8x1xf32>
    %39 = vector.broadcast %38 : vector<2x8x1xf32> to vector<2x8x8xf32>
    %40 = arith.subf %36, %39 : vector<2x8x8xf32>
    %41 = math.exp %40 : vector<2x8x8xf32>
    %cst_16 = arith.constant dense<0.000000e+00> : vector<2x8xf32>
    %42 = vector.multi_reduction <add>, %41, %cst_16 [2] : vector<2x8x8xf32> to vector<2x8xf32>
    %43 = vector.shape_cast %42 : vector<2x8xf32> to vector<2x8x1xf32>
    %44 = tpu.reciprocal %43 {approx = true} : vector<2x8x1xf32> -> vector<2x8x1xf32>
    %45 = vector.broadcast %44 : vector<2x8x1xf32> to vector<2x8x8xf32>
    %46 = arith.mulf %41, %45 : vector<2x8x8xf32>
    %47 = vector.extract_strided_slice %24 {offsets = [0, 0, 16], sizes = [2, 8, 8], strides = [1, 1, 1]} : vector<2x8x32xf32> to vector<2x8x8xf32>
    %cst_17 = arith.constant dense<0xFF800000> : vector<2x8xf32>
    %48 = vector.multi_reduction <maximumf>, %47, %cst_17 [2] : vector<2x8x8xf32> to vector<2x8xf32>
    %49 = vector.shape_cast %48 : vector<2x8xf32> to vector<2x8x1xf32>
    %50 = vector.broadcast %49 : vector<2x8x1xf32> to vector<2x8x8xf32>
    %51 = arith.subf %47, %50 : vector<2x8x8xf32>
    %52 = math.exp %51 : vector<2x8x8xf32>
    %cst_18 = arith.constant dense<0.000000e+00> : vector<2x8xf32>
    %53 = vector.multi_reduction <add>, %52, %cst_18 [2] : vector<2x8x8xf32> to vector<2x8xf32>
    %54 = vector.shape_cast %53 : vector<2x8xf32> to vector<2x8x1xf32>
    %55 = tpu.reciprocal %54 {approx = true} : vector<2x8x1xf32> -> vector<2x8x1xf32>
    %56 = vector.broadcast %55 : vector<2x8x1xf32> to vector<2x8x8xf32>
    %57 = arith.mulf %52, %56 : vector<2x8x8xf32>
    %58 = vector.extract_strided_slice %24 {offsets = [0, 0, 24], sizes = [2, 8, 8], strides = [1, 1, 1]} : vector<2x8x32xf32> to vector<2x8x8xf32>
    %cst_19 = arith.constant dense<0xFF800000> : vector<2x8xf32>
    %59 = vector.multi_reduction <maximumf>, %58, %cst_19 [2] : vector<2x8x8xf32> to vector<2x8xf32>
    %60 = vector.shape_cast %59 : vector<2x8xf32> to vector<2x8x1xf32>
    %61 = vector.broadcast %60 : vector<2x8x1xf32> to vector<2x8x8xf32>
    %62 = arith.subf %58, %61 : vector<2x8x8xf32>
    %63 = math.exp %62 : vector<2x8x8xf32>
    %cst_20 = arith.constant dense<0.000000e+00> : vector<2x8xf32>
    %64 = vector.multi_reduction <add>, %63, %cst_20 [2] : vector<2x8x8xf32> to vector<2x8xf32>
    %65 = vector.shape_cast %64 : vector<2x8xf32> to vector<2x8x1xf32>
    %66 = tpu.reciprocal %65 {approx = true} : vector<2x8x1xf32> -> vector<2x8x1xf32>
    %67 = vector.broadcast %66 : vector<2x8x1xf32> to vector<2x8x8xf32>
    %68 = arith.mulf %63, %67 : vector<2x8x8xf32>
    %69 = tpu.concatenate %35, %46, %57, %68 in 2 : vector<2x8x8xf32>, vector<2x8x8xf32>, vector<2x8x8xf32>, vector<2x8x8xf32> -> vector<2x8x32xf32>
    "tpu.trace_start"() <{level = 10 : i32, message = "bqj,bjc->bqc"}> : () -> ()
    %cst_21 = arith.constant dense<0.000000e+00> : vector<2x8x32xf32>
    %70 = tpu.matmul %69, %22, %cst_21 {dimension_numbers = #tpu.dot_dimension_numbers<[2], [1], [1], [2], [0, 0, 0, 1, 1, 2], [0], [0]>} : vector<2x8x32xf32>, vector<2x32x32xf32>, vector<2x8x32xf32> -> vector<2x8x32xf32>
    "tpu.trace_stop"() : () -> ()
    %71 = vector.shape_cast %70 : vector<2x8x32xf32> to vector<16x32xf32>
    %c0_22 = arith.constant 0 : index
    %c0_23 = arith.constant 0 : index
    %72 = vector.load %arg8[%c0_22, %c0_23] : memref<32x32xf32, #tpu.memory_space<vmem>>, vector<32x32xf32>
    %cst_24 = arith.constant dense<0.000000e+00> : vector<16x32xf32>
    %73 = tpu.matmul %71, %72, %cst_24 {dimension_numbers = #tpu.dot_dimension_numbers<[1], [0], [0], [1], [0, 0, 1, 1], [], []>} : vector<16x32xf32>, vector<32x32xf32>, vector<16x32xf32> -> vector<16x32xf32>
    %c0_25 = arith.constant 0 : index
    %c0_26 = arith.constant 0 : index
    %74 = vector.load %arg9[%c0_25, %c0_26] : memref<1x32xf32, #tpu.memory_space<vmem>>, vector<1x32xf32>
    %75 = vector.broadcast %74 : vector<1x32xf32> to vector<16x32xf32>
    %76 = arith.addf %73, %75 : vector<16x32xf32>
    %77 = arith.addf %0, %76 : vector<16x32xf32>
    %c0_27 = arith.constant 0 : index
    %c0_28 = arith.constant 0 : index
    %78 = vector.load %arg20[%c0_27, %c0_28] : memref<1x32xf32, #tpu.memory_space<vmem>>, vector<1x32xf32>
    %c0_29 = arith.constant 0 : index
    %c0_30 = arith.constant 0 : index
    %79 = vector.load %arg21[%c0_29, %c0_30] : memref<1x32xf32, #tpu.memory_space<vmem>>, vector<1x32xf32>
    %cst_31 = arith.constant dense<0.000000e+00> : vector<16xf32>
    %80 = vector.multi_reduction <add>, %77, %cst_31 [1] : vector<16x32xf32> to vector<16xf32>
    %81 = vector.shape_cast %80 : vector<16xf32> to vector<16x1xf32>
    %cst_32 = arith.constant 3.200000e+01 : f32
    %82 = vector.broadcast %cst_32 : f32 to vector<16x1xf32>
    %83 = arith.divf %81, %82 : vector<16x1xf32>
    %84 = vector.broadcast %83 : vector<16x1xf32> to vector<16x32xf32>
    %85 = arith.subf %77, %84 : vector<16x32xf32>
    %86 = arith.mulf %85, %85 : vector<16x32xf32>
    %cst_33 = arith.constant dense<0.000000e+00> : vector<16xf32>
    %87 = vector.multi_reduction <add>, %86, %cst_33 [1] : vector<16x32xf32> to vector<16xf32>
    %88 = vector.shape_cast %87 : vector<16xf32> to vector<16x1xf32>
    %cst_34 = arith.constant 3.200000e+01 : f32
    %89 = vector.broadcast %cst_34 : f32 to vector<16x1xf32>
    %90 = arith.divf %88, %89 : vector<16x1xf32>
    %cst_35 = arith.constant 9.99999974E-6 : f32
    %91 = vector.broadcast %cst_35 : f32 to vector<16x1xf32>
    %92 = arith.addf %90, %91 : vector<16x1xf32>
    %93 = math.rsqrt %92 : vector<16x1xf32>
    %94 = vector.broadcast %93 : vector<16x1xf32> to vector<16x32xf32>
    %95 = arith.mulf %85, %94 : vector<16x32xf32>
    %96 = vector.broadcast %78 : vector<1x32xf32> to vector<16x32xf32>
    %97 = arith.mulf %95, %96 : vector<16x32xf32>
    %98 = vector.broadcast %79 : vector<1x32xf32> to vector<16x32xf32>
    %99 = arith.addf %97, %98 : vector<16x32xf32>
    %c0_36 = arith.constant 0 : index
    %c0_37 = arith.constant 0 : index
    %100 = vector.load %arg10[%c0_36, %c0_37] : memref<32x32xf32, #tpu.memory_space<vmem>>, vector<32x32xf32>
    %cst_38 = arith.constant dense<0.000000e+00> : vector<16x32xf32>
    %101 = tpu.matmul %99, %100, %cst_38 {dimension_numbers = #tpu.dot_dimension_numbers<[1], [0], [0], [1], [0, 0, 1, 1], [], []>} : vector<16x32xf32>, vector<32x32xf32>, vector<16x32xf32> -> vector<16x32xf32>
    %c0_39 = arith.constant 0 : index
    %c0_40 = arith.constant 0 : index
    %102 = vector.load %arg11[%c0_39, %c0_40] : memref<1x32xf32, #tpu.memory_space<vmem>>, vector<1x32xf32>
    %103 = vector.broadcast %102 : vector<1x32xf32> to vector<16x32xf32>
    %104 = arith.addf %101, %103 : vector<16x32xf32>
    %c0_41 = arith.constant 0 : index
    %c0_42 = arith.constant 0 : index
    %105 = vector.load %arg12[%c0_41, %c0_42] : memref<32x64xf32, #tpu.memory_space<vmem>>, vector<32x64xf32>
    %cst_43 = arith.constant dense<0.000000e+00> : vector<16x64xf32>
    %106 = tpu.matmul %1, %105, %cst_43 {dimension_numbers = #tpu.dot_dimension_numbers<[1], [0], [0], [1], [0, 0, 1, 1], [], []>} : vector<16x32xf32>, vector<32x64xf32>, vector<16x64xf32> -> vector<16x64xf32>
    %c0_44 = arith.constant 0 : index
    %c0_45 = arith.constant 0 : index
    %107 = vector.load %arg13[%c0_44, %c0_45] : memref<1x64xf32, #tpu.memory_space<vmem>>, vector<1x64xf32>
    %108 = vector.broadcast %107 : vector<1x64xf32> to vector<16x64xf32>
    %109 = arith.addf %106, %108 : vector<16x64xf32>
    %110 = vector.extract_strided_slice %109 {offsets = [0, 0], sizes = [16, 32], strides = [1, 1]} : vector<16x64xf32> to vector<16x32xf32>
    %111 = vector.shape_cast %110 : vector<16x32xf32> to vector<2x8x32xf32>
    %112 = vector.extract_strided_slice %109 {offsets = [0, 32], sizes = [16, 32], strides = [1, 1]} : vector<16x64xf32> to vector<16x32xf32>
    %113 = vector.shape_cast %112 : vector<16x32xf32> to vector<2x8x32xf32>
    %c0_46 = arith.constant 0 : index
    %c0_47 = arith.constant 0 : index
    %c0_48 = arith.constant 0 : index
    %114 = vector.load %arg3[%c0_46, %c0_47, %c0_48] : memref<2x8x32xf32, #tpu.memory_space<vmem>>, vector<2x8x32xf32>
    %c0_49 = arith.constant 0 : index
    %c0_50 = arith.constant 0 : index
    %115 = vector.load %arg5[%c0_49, %c0_50] : memref<32x32xf32, #tpu.memory_space<vmem>>, vector<32x32xf32>
    %116 = vector.shape_cast %104 : vector<16x32xf32> to vector<2x8x32xf32>
    %117 = tpu.concatenate %111, %111, %111, %111 in 1 : vector<2x8x32xf32>, vector<2x8x32xf32>, vector<2x8x32xf32>, vector<2x8x32xf32> -> vector<2x32x32xf32>
    %118 = vector.shape_cast %115 : vector<32x32xf32> to vector<1x32x32xf32>
    %119 = vector.broadcast %118 : vector<1x32x32xf32> to vector<2x32x32xf32>
    %120 = arith.mulf %117, %119 : vector<2x32x32xf32>
    %121 = tpu.concatenate %113, %113, %113, %113 in 1 : vector<2x8x32xf32>, vector<2x8x32xf32>, vector<2x8x32xf32>, vector<2x8x32xf32> -> vector<2x32x32xf32>
    %122 = vector.shape_cast %115 : vector<32x32xf32> to vector<1x32x32xf32>
    %123 = vector.broadcast %122 : vector<1x32x32xf32> to vector<2x32x32xf32>
    %124 = arith.mulf %121, %123 : vector<2x32x32xf32>
    "tpu.trace_start"() <{level = 10 : i32, message = "bqc,bjc->bqj"}> : () -> ()
    %cst_51 = arith.constant dense<0.000000e+00> : vector<2x8x32xf32>
    %125 = tpu.matmul %116, %120, %cst_51 {dimension_numbers = #tpu.dot_dimension_numbers<[2], [2], [1], [1], [0, 0, 0, 1, 1, 1], [0], [0]>} : vector<2x8x32xf32>, vector<2x32x32xf32>, vector<2x8x32xf32> -> vector<2x8x32xf32>
    "tpu.trace_stop"() : () -> ()
    %126 = arith.addf %125, %114 : vector<2x8x32xf32>
    %127 = vector.extract_strided_slice %126 {offsets = [0, 0, 0], sizes = [2, 8, 8], strides = [1, 1, 1]} : vector<2x8x32xf32> to vector<2x8x8xf32>
    %cst_52 = arith.constant dense<0xFF800000> : vector<2x8xf32>
    %128 = vector.multi_reduction <maximumf>, %127, %cst_52 [2] : vector<2x8x8xf32> to vector<2x8xf32>
    %129 = vector.shape_cast %128 : vector<2x8xf32> to vector<2x8x1xf32>
    %130 = vector.broadcast %129 : vector<2x8x1xf32> to vector<2x8x8xf32>
    %131 = arith.subf %127, %130 : vector<2x8x8xf32>
    %132 = math.exp %131 : vector<2x8x8xf32>
    %cst_53 = arith.constant dense<0.000000e+00> : vector<2x8xf32>
    %133 = vector.multi_reduction <add>, %132, %cst_53 [2] : vector<2x8x8xf32> to vector<2x8xf32>
    %134 = vector.shape_cast %133 : vector<2x8xf32> to vector<2x8x1xf32>
    %135 = vector.broadcast %134 : vector<2x8x1xf32> to vector<2x8x8xf32>
    %136 = arith.divf %132, %135 : vector<2x8x8xf32>
    %137 = vector.extract_strided_slice %126 {offsets = [0, 0, 8], sizes = [2, 8, 8], strides = [1, 1, 1]} : vector<2x8x32xf32> to vector<2x8x8xf32>
    %cst_54 = arith.constant dense<0xFF800000> : vector<2x8xf32>
    %138 = vector.multi_reduction <maximumf>, %137, %cst_54 [2] : vector<2x8x8xf32> to vector<2x8xf32>
    %139 = vector.shape_cast %138 : vector<2x8xf32> to vector<2x8x1xf32>
    %140 = vector.broadcast %139 : vector<2x8x1xf32> to vector<2x8x8xf32>
    %141 = arith.subf %137, %140 : vector<2x8x8xf32>
    %142 = math.exp %141 : vector<2x8x8xf32>
    %cst_55 = arith.constant dense<0.000000e+00> : vector<2x8xf32>
    %143 = vector.multi_reduction <add>, %142, %cst_55 [2] : vector<2x8x8xf32> to vector<2x8xf32>
    %144 = vector.shape_cast %143 : vector<2x8xf32> to vector<2x8x1xf32>
    %145 = vector.broadcast %144 : vector<2x8x1xf32> to vector<2x8x8xf32>
    %146 = arith.divf %142, %145 : vector<2x8x8xf32>
    %147 = vector.extract_strided_slice %126 {offsets = [0, 0, 16], sizes = [2, 8, 8], strides = [1, 1, 1]} : vector<2x8x32xf32> to vector<2x8x8xf32>
    %cst_56 = arith.constant dense<0xFF800000> : vector<2x8xf32>
    %148 = vector.multi_reduction <maximumf>, %147, %cst_56 [2] : vector<2x8x8xf32> to vector<2x8xf32>
    %149 = vector.shape_cast %148 : vector<2x8xf32> to vector<2x8x1xf32>
    %150 = vector.broadcast %149 : vector<2x8x1xf32> to vector<2x8x8xf32>
    %151 = arith.subf %147, %150 : vector<2x8x8xf32>
    %152 = math.exp %151 : vector<2x8x8xf32>
    %cst_57 = arith.constant dense<0.000000e+00> : vector<2x8xf32>
    %153 = vector.multi_reduction <add>, %152, %cst_57 [2] : vector<2x8x8xf32> to vector<2x8xf32>
    %154 = vector.shape_cast %153 : vector<2x8xf32> to vector<2x8x1xf32>
    %155 = vector.broadcast %154 : vector<2x8x1xf32> to vector<2x8x8xf32>
    %156 = arith.divf %152, %155 : vector<2x8x8xf32>
    %157 = vector.extract_strided_slice %126 {offsets = [0, 0, 24], sizes = [2, 8, 8], strides = [1, 1, 1]} : vector<2x8x32xf32> to vector<2x8x8xf32>
    %cst_58 = arith.constant dense<0xFF800000> : vector<2x8xf32>
    %158 = vector.multi_reduction <maximumf>, %157, %cst_58 [2] : vector<2x8x8xf32> to vector<2x8xf32>
    %159 = vector.shape_cast %158 : vector<2x8xf32> to vector<2x8x1xf32>
    %160 = vector.broadcast %159 : vector<2x8x1xf32> to vector<2x8x8xf32>
    %161 = arith.subf %157, %160 : vector<2x8x8xf32>
    %162 = math.exp %161 : vector<2x8x8xf32>
    %cst_59 = arith.constant dense<0.000000e+00> : vector<2x8xf32>
    %163 = vector.multi_reduction <add>, %162, %cst_59 [2] : vector<2x8x8xf32> to vector<2x8xf32>
    %164 = vector.shape_cast %163 : vector<2x8xf32> to vector<2x8x1xf32>
    %165 = vector.broadcast %164 : vector<2x8x1xf32> to vector<2x8x8xf32>
    %166 = arith.divf %162, %165 : vector<2x8x8xf32>
    %167 = tpu.concatenate %136, %146, %156, %166 in 2 : vector<2x8x8xf32>, vector<2x8x8xf32>, vector<2x8x8xf32>, vector<2x8x8xf32> -> vector<2x8x32xf32>
    "tpu.trace_start"() <{level = 10 : i32, message = "bqj,bjc->bqc"}> : () -> ()
    %cst_60 = arith.constant dense<0.000000e+00> : vector<2x8x32xf32>
    %168 = tpu.matmul %167, %124, %cst_60 {dimension_numbers = #tpu.dot_dimension_numbers<[2], [1], [1], [2], [0, 0, 0, 1, 1, 2], [0], [0]>} : vector<2x8x32xf32>, vector<2x32x32xf32>, vector<2x8x32xf32> -> vector<2x8x32xf32>
    "tpu.trace_stop"() : () -> ()
    %169 = vector.shape_cast %168 : vector<2x8x32xf32> to vector<16x32xf32>
    %c0_61 = arith.constant 0 : index
    %c0_62 = arith.constant 0 : index
    %170 = vector.load %arg14[%c0_61, %c0_62] : memref<32x32xf32, #tpu.memory_space<vmem>>, vector<32x32xf32>
    %cst_63 = arith.constant dense<0.000000e+00> : vector<16x32xf32>
    %171 = tpu.matmul %169, %170, %cst_63 {dimension_numbers = #tpu.dot_dimension_numbers<[1], [0], [0], [1], [0, 0, 1, 1], [], []>} : vector<16x32xf32>, vector<32x32xf32>, vector<16x32xf32> -> vector<16x32xf32>
    %c0_64 = arith.constant 0 : index
    %c0_65 = arith.constant 0 : index
    %172 = vector.load %arg15[%c0_64, %c0_65] : memref<1x32xf32, #tpu.memory_space<vmem>>, vector<1x32xf32>
    %173 = vector.broadcast %172 : vector<1x32xf32> to vector<16x32xf32>
    %174 = arith.addf %171, %173 : vector<16x32xf32>
    %175 = arith.addf %99, %174 : vector<16x32xf32>
    %c0_66 = arith.constant 0 : index
    %c0_67 = arith.constant 0 : index
    %176 = vector.load %arg22[%c0_66, %c0_67] : memref<1x32xf32, #tpu.memory_space<vmem>>, vector<1x32xf32>
    %c0_68 = arith.constant 0 : index
    %c0_69 = arith.constant 0 : index
    %177 = vector.load %arg23[%c0_68, %c0_69] : memref<1x32xf32, #tpu.memory_space<vmem>>, vector<1x32xf32>
    %cst_70 = arith.constant dense<0.000000e+00> : vector<16xf32>
    %178 = vector.multi_reduction <add>, %175, %cst_70 [1] : vector<16x32xf32> to vector<16xf32>
    %179 = vector.shape_cast %178 : vector<16xf32> to vector<16x1xf32>
    %cst_71 = arith.constant 3.200000e+01 : f32
    %180 = vector.broadcast %cst_71 : f32 to vector<16x1xf32>
    %181 = arith.divf %179, %180 : vector<16x1xf32>
    %182 = vector.broadcast %181 : vector<16x1xf32> to vector<16x32xf32>
    %183 = arith.subf %175, %182 : vector<16x32xf32>
    %184 = arith.mulf %183, %183 : vector<16x32xf32>
    %cst_72 = arith.constant dense<0.000000e+00> : vector<16xf32>
    %185 = vector.multi_reduction <add>, %184, %cst_72 [1] : vector<16x32xf32> to vector<16xf32>
    %186 = vector.shape_cast %185 : vector<16xf32> to vector<16x1xf32>
    %cst_73 = arith.constant 3.200000e+01 : f32
    %187 = vector.broadcast %cst_73 : f32 to vector<16x1xf32>
    %188 = arith.divf %186, %187 : vector<16x1xf32>
    %cst_74 = arith.constant 9.99999974E-6 : f32
    %189 = vector.broadcast %cst_74 : f32 to vector<16x1xf32>
    %190 = arith.addf %188, %189 : vector<16x1xf32>
    %191 = math.rsqrt %190 : vector<16x1xf32>
    %192 = vector.broadcast %191 : vector<16x1xf32> to vector<16x32xf32>
    %193 = arith.mulf %183, %192 : vector<16x32xf32>
    %194 = vector.broadcast %176 : vector<1x32xf32> to vector<16x32xf32>
    %195 = arith.mulf %193, %194 : vector<16x32xf32>
    %196 = vector.broadcast %177 : vector<1x32xf32> to vector<16x32xf32>
    %197 = arith.addf %195, %196 : vector<16x32xf32>
    %c0_75 = arith.constant 0 : index
    %c0_76 = arith.constant 0 : index
    %c0_77 = arith.constant 0 : index
    %198 = vector.load %arg27[%c0_75, %c0_76, %c0_77] : memref<2x8x32xf32, #tpu.memory_space<vmem>>, vector<2x8x32xf32>
    tpu.vector_store %arg27[%c0_75, %c0_76, %c0_77], %167 {strides = array<i32>} : memref<2x8x32xf32, #tpu.memory_space<vmem>>, vector<2x8x32xf32>,
    %c0_78 = arith.constant 0 : index
    %c0_79 = arith.constant 0 : index
    %199 = vector.load %arg16[%c0_78, %c0_79] : memref<32x64xf32, #tpu.memory_space<vmem>>, vector<32x64xf32>
    %cst_80 = arith.constant dense<0.000000e+00> : vector<16x64xf32>
    %200 = tpu.matmul %197, %199, %cst_80 {dimension_numbers = #tpu.dot_dimension_numbers<[1], [0], [0], [1], [0, 0, 1, 1], [], []>} : vector<16x32xf32>, vector<32x64xf32>, vector<16x64xf32> -> vector<16x64xf32>
    %c0_81 = arith.constant 0 : index
    %c0_82 = arith.constant 0 : index
    %201 = vector.load %arg17[%c0_81, %c0_82] : memref<1x64xf32, #tpu.memory_space<vmem>>, vector<1x64xf32>
    %202 = vector.broadcast %201 : vector<1x64xf32> to vector<16x64xf32>
    %203 = arith.addf %200, %202 : vector<16x64xf32>
    %cst_83 = arith.constant 0.000000e+00 : f32
    %204 = vector.broadcast %cst_83 : f32 to vector<16x64xf32>
    %205 = arith.maximumf %203, %204 : vector<16x64xf32>
    %c0_84 = arith.constant 0 : index
    %c0_85 = arith.constant 0 : index
    %206 = vector.load %arg18[%c0_84, %c0_85] : memref<64x32xf32, #tpu.memory_space<vmem>>, vector<64x32xf32>
    %cst_86 = arith.constant dense<0.000000e+00> : vector<16x32xf32>
    %207 = tpu.matmul %205, %206, %cst_86 {dimension_numbers = #tpu.dot_dimension_numbers<[1], [0], [0], [1], [0, 0, 1, 1], [], []>} : vector<16x64xf32>, vector<64x32xf32>, vector<16x32xf32> -> vector<16x32xf32>
    %c0_87 = arith.constant 0 : index
    %c0_88 = arith.constant 0 : index
    %208 = vector.load %arg19[%c0_87, %c0_88] : memref<1x32xf32, #tpu.memory_space<vmem>>, vector<1x32xf32>
    %209 = vector.broadcast %208 : vector<1x32xf32> to vector<16x32xf32>
    %210 = arith.addf %207, %209 : vector<16x32xf32>
    %211 = arith.addf %197, %210 : vector<16x32xf32>
    %c0_89 = arith.constant 0 : index
    %c0_90 = arith.constant 0 : index
    %212 = vector.load %arg24[%c0_89, %c0_90] : memref<1x32xf32, #tpu.memory_space<vmem>>, vector<1x32xf32>
    %c0_91 = arith.constant 0 : index
    %c0_92 = arith.constant 0 : index
    %213 = vector.load %arg25[%c0_91, %c0_92] : memref<1x32xf32, #tpu.memory_space<vmem>>, vector<1x32xf32>
    %cst_93 = arith.constant dense<0.000000e+00> : vector<16xf32>
    %214 = vector.multi_reduction <add>, %211, %cst_93 [1] : vector<16x32xf32> to vector<16xf32>
    %215 = vector.shape_cast %214 : vector<16xf32> to vector<16x1xf32>
    %cst_94 = arith.constant 3.200000e+01 : f32
    %216 = vector.broadcast %cst_94 : f32 to vector<16x1xf32>
    %217 = arith.divf %215, %216 : vector<16x1xf32>
    %218 = vector.broadcast %217 : vector<16x1xf32> to vector<16x32xf32>
    %219 = arith.subf %211, %218 : vector<16x32xf32>
    %220 = arith.mulf %219, %219 : vector<16x32xf32>
    %cst_95 = arith.constant dense<0.000000e+00> : vector<16xf32>
    %221 = vector.multi_reduction <add>, %220, %cst_95 [1] : vector<16x32xf32> to vector<16xf32>
    %222 = vector.shape_cast %221 : vector<16xf32> to vector<16x1xf32>
    %cst_96 = arith.constant 3.200000e+01 : f32
    %223 = vector.broadcast %cst_96 : f32 to vector<16x1xf32>
    %224 = arith.divf %222, %223 : vector<16x1xf32>
    %cst_97 = arith.constant 9.99999974E-6 : f32
    %225 = vector.broadcast %cst_97 : f32 to vector<16x1xf32>
    %226 = arith.addf %224, %225 : vector<16x1xf32>
    %227 = math.rsqrt %226 : vector<16x1xf32>
    %228 = vector.broadcast %227 : vector<16x1xf32> to vector<16x32xf32>
    %229 = arith.mulf %219, %228 : vector<16x32xf32>
    %230 = vector.broadcast %212 : vector<1x32xf32> to vector<16x32xf32>
    %231 = arith.mulf %229, %230 : vector<16x32xf32>
    %232 = vector.broadcast %213 : vector<1x32xf32> to vector<16x32xf32>
    %233 = arith.addf %231, %232 : vector<16x32xf32>
    %c0_98 = arith.constant 0 : index
    %c0_99 = arith.constant 0 : index
    %234 = vector.load %arg26[%c0_98, %c0_99] : memref<16x32xf32, #tpu.memory_space<vmem>>, vector<16x32xf32>
    tpu.vector_store %arg26[%c0_98, %c0_99], %233 {strides = array<i32>} : memref<16x32xf32, #tpu.memory_space<vmem>>, vector<16x32xf32>,
    return
  }
}

</mosaic_0001>

<bundles_post_ra>
// kernel: tile.14
= control target key start
LH: loop header
LB: loop body
LE: loop exit
PB: predicated region body
PF: predicated region fallthrough
CT: control target
= control target key end

     0   :  { %vm83_vm0 = vcmask 1047556   ;;  %vm85_vm1 = vcmask 64512   ;;  %s196_s9 = smov 24   ;;  %s197_s14 = smov 8   ;;  %vm104_vm2 = vcmask 261312   ;;  %vm125_vm3 = vcmask 195712   ;;  %s290_s0 = inlined_call_operand.vmem [shape: f32[2,8,4,8], index: 0, kind: input, shape index: {}]   ;;  %s291_s1 = inlined_call_operand.vmem [shape: f32[2,8,32], index: 1, kind: output, shape index: {}]  }
   0x1   :  { %v181_v0 = vld [vmem:[%s290_s0 + $0x1c] sm:$0xf]  ;;  %v182_v1 = vld [vmem:[%s290_s0 + $0x18] sm:$0xf]  ;;  %v183_v2 = vld [vmem:[%s290_s0 + $0x14] sm:$0xf] }
   0x2   :  { %49 = vst [vmem:[#allocation0 + $0x38] sm:$0xf] %v181_v0  ;;  %54 = vst [vmem:[#allocation0 + $0x30] sm:$0xf] %v182_v1  ;;  %v184_v3 = vld [vmem:[%s290_s0 + $0x10] sm:$0xf] }
   0x3   :  { %59 = vst [vmem:[#allocation0 + $0x28] sm:$0xf] %v183_v2  ;;  %v185_v4 = vld [vmem:[%s290_s0 + $0xc] sm:$0xf]  ;;  %v186_v5 = vld [vmem:[%s290_s0 + $0x8] sm:$0xf] }
   0x4   :  { %64 = vst [vmem:[#allocation0 + $0x20] sm:$0xf] %v184_v3  ;;  %69 = vst [vmem:[#allocation0 + $0x18] sm:$0xf] %v185_v4  ;;  %v187_v6 = vld [vmem:[%s290_s0 + $0x4] sm:$0xf] }
   0x5   :  { %74 = vst [vmem:[#allocation0 + $0x10] sm:$0xf] %v186_v5  ;;  %v79_v7 = vld [vmem:[%s290_s0] sm:$0xf]  ;;  %78 = vst [vmem:[#allocation0 + $0x8] sm:$0xf] %v187_v6 }
   0x6   :  { %80 = vst [vmem:[#allocation0] sm:$0xf] %v79_v7  ;;  %v173_v8 = vld [vmem:[%s290_s0 + $0x3c] sm:$0xf]  ;;  %v174_v9 = vld [vmem:[%s290_s0 + $0x38] sm:$0xf] }
   0x7   :  { %9 = vst [vmem:[#allocation0 + $0x78] sm:$0xf] %v173_v8  ;;  %14 = vst [vmem:[#allocation0 + $0x70] sm:$0xf] %v174_v9  ;;  %v175_v10 = vld [vmem:[%s290_s0 + $0x34] sm:$0xf] }
   0x8   :  { %v176_v11 = vld [vmem:[%s290_s0 + $0x30] sm:$0xf]  ;;  %v177_v12 = vld [vmem:[%s290_s0 + $0x2c] sm:$0xf]  ;;  %19 = vst [vmem:[#allocation0 + $0x68] sm:$0xf] %v175_v10 }
   0x9   :  { %24 = vst [vmem:[#allocation0 + $0x60] sm:$0xf] %v176_v11  ;;  %29 = vst [vmem:[#allocation0 + $0x58] sm:$0xf] %v177_v12  ;;  %v178_v13 = vld [vmem:[%s290_s0 + $0x28] sm:$0xf] }
   0xa   :  { %v179_v14 = vld [vmem:[%s290_s0 + $0x24] sm:$0xf]  ;;  %v180_v15 = vld [vmem:[%s290_s0 + $0x20] sm:$0xf]  ;;  %34 = vst [vmem:[#allocation0 + $0x50] sm:$0xf] %v178_v13 }
   0xb   :  { %39 = vst [vmem:[#allocation0 + $0x48] sm:$0xf] %v179_v14  ;;  %44 = vst [vmem:[#allocation0 + $0x40] sm:$0xf] %v180_v15  ;;  %s195_s0 = smov 16   ;;  %vm146_vm4 = vcmask 130112  }
   0xc   :  { %v120_v16 = vld [vmem:[#allocation0 + $0x2] ss:$8 sm:$0xf0]   ;;  %v99_v17 = vld [vmem:[#allocation0 + $0x3] ss:$8 sm:$0xf0]  }
   0xd   :  { %v118_v18 = vld [vmem:[#allocation0 + $0x2] ss:$8 sm:$0xf]   ;;  %v97_v19 = vld [vmem:[#allocation0 + $0x3] ss:$8 sm:$0xf]  }
   0xe   :  { %v122_v20 = vsel %vm83_vm0, %v120_v16, %v118_v18  ;;  %v101_v21 = vsel %vm83_vm0, %v99_v17, %v97_v19  ;;  %v139_v24 = vld [vmem:[#allocation0 + $0x1] ss:$8 sm:$0xf]   ;;  %v81_v32 = vld [vmem:[#allocation0] ss:$8 sm:$0xf]  }
   0xf   :  { %123 = vrot.lane.b32.xlu1 %v122_v20, %s195_s0  ;;  %102 = vrot.lane.b32.xlu0 %v101_v21, %s196_s9  ;;  %v141_v25 = vld [vmem:[#allocation0 + $0x1] ss:$8 sm:$0xf0]   ;;  %v82_v33 = vld [vmem:[#allocation0] ss:$8 sm:$0xf0]  }
  0x10   :  { %v130_v22 = vld [vmem:[#allocation0 + $0x42] ss:$8 sm:$0xf0]   ;;  %v109_v23 = vld [vmem:[#allocation0 + $0x43] ss:$8 sm:$0xf0]   ;;  %v84_v34 = vsel %vm83_vm0, %v82_v33, %v81_v32  ;;  %v143_v38 = vsel %vm83_vm0, %v141_v25, %v139_v24 }
  0x11   :  { %v151_v31 = vld [vmem:[#allocation0 + $0x41] ss:$8 sm:$0xf0]   ;;  %v90_v36 = vld [vmem:[#allocation0 + $0x40] ss:$8 sm:$0xf0]  }
  0x12   :  { %v128_v26 = vld [vmem:[#allocation0 + $0x42] ss:$8 sm:$0xf]   ;;  %v107_v27 = vld [vmem:[#allocation0 + $0x43] ss:$8 sm:$0xf]  }
  0x13   :  { %v132_v28 = vsel %vm83_vm0, %v130_v22, %v128_v26  ;;  %v111_v29 = vsel %vm83_vm0, %v109_v23, %v107_v27  ;;  %v149_v30 = vld [vmem:[#allocation0 + $0x41] ss:$8 sm:$0xf]   ;;  %v88_v35 = vld [vmem:[#allocation0 + $0x40] ss:$8 sm:$0xf]  }
  0x14   :  { %133 = vrot.lane.b32.xlu1 %v132_v28, %s195_s0  ;;  %112 = vrot.lane.b32.xlu0 %v111_v29, %s196_s9  ;;  %v153_v37 = vsel %vm83_vm0, %v151_v31, %v149_v30  ;;  %86 = vst.msk [vmem:[%s291_s1] sm:$0xff] %vm85_vm1, %v84_v34   ;;  %v92_v39 = vsel %vm83_vm0, %v90_v36, %v88_v35 }
  0x15   :  { %188 = vst.msk [vmem:[%s291_s1 + $0x8] sm:$0xff] %vm85_vm1, %v92_v39  }
  0x18   :  { %154 = vrot.lane.b32.xlu1 %v153_v37, %s197_s14  ;;  %144 = vrot.lane.b32.xlu0 %v143_v38, %s197_s14 }
  0x81   :  { %v124_v40 = vpop.permute.xlu1 %123   ;;  %v103_v41 = vpop.permute.xlu0 %102  }
  0x82   :  { %105 = vst.msk [vmem:[%s291_s1] sm:$0xff] %vm104_vm2, %v103_v41  }
  0x83   :  { %126 = vst.msk [vmem:[%s291_s1] sm:$0xff] %vm125_vm3, %v124_v40  }
  0x86   :  { %v134_v42 = vpop.permute.xlu1 %133   ;;  %v113_v43 = vpop.permute.xlu0 %112  }
  0x87   :  { %189 = vst.msk [vmem:[%s291_s1 + $0x8] sm:$0xff] %vm104_vm2, %v113_v43  }
  0x88   :  { %190 = vst.msk [vmem:[%s291_s1 + $0x8] sm:$0xff] %vm125_vm3, %v134_v42  }
  0x8a   :  { %v155_v44 = vpop.permute.xlu1 %154   ;;  %v145_v45 = vpop.permute.xlu0 %144  }
  0x8b   :  { %191 = vst.msk [vmem:[%s291_s1 + $0x8] sm:$0xff] %vm146_vm4, %v155_v44   ;;  %147 = vst.msk [vmem:[%s291_s1] sm:$0xff] %vm146_vm4, %v145_v45  }

// kernel: decoder_layer.1
= control target key start
LH: loop header
LB: loop body
LE: loop exit
PB: predicated region body
PF: predicated region fallthrough
CT: control target
= control target key end

     0   :  { %s3131_s0 = inlined_call_operand.vmem [shape: f32[16,32], index: 0, kind: input, shape index: {}]   ;;  %s3132_s1 = inlined_call_operand.hbm [shape: f32[16,32], index: 1, kind: input, shape index: {}]   ;;  %s3133_s2 = inlined_call_operand.vmem [shape: f32[2,8,32], index: 2, kind: input, shape index: {}]   ;;  %s3134_s3 = inlined_call_operand.vmem [shape: f32[2,8,32], index: 3, kind: input, shape index: {}]   ;;  %s3135_s4 = inlined_call_operand.vmem [shape: f32[32,32], index: 4, kind: input, shape index: {}]   ;;  %s3136_s5 = inlined_call_operand.vmem [shape: f32[32,32], index: 5, kind: input, shape index: {}]   ;;  %s3137_s6 = inlined_call_operand.vmem [shape: f32[32,96], index: 6, kind: input, shape index: {}]   ;;  %s3138_s7 = inlined_call_operand.vmem [shape: f32[1,96], index: 7, kind: input, shape index: {}]   ;;  %s3139_s8 = inlined_call_operand.vmem [shape: f32[32,32], index: 8, kind: input, shape index: {}]   ;;  %s3140_s9 = inlined_call_operand.vmem [shape: f32[1,32], index: 9, kind: input, shape index: {}]   ;;  %s3141_s10 = inlined_call_operand.vmem [shape: f32[32,32], index: 10, kind: input, shape index: {}]   ;;  %s3142_s11 = inlined_call_operand.vmem [shape: f32[1,32], index: 11, kind: input, shape index: {}]   ;;  %s3143_s12 = inlined_call_operand.vmem [shape: f32[32,64], index: 12, kind: input, shape index: {}]   ;;  %s3144_s13 = inlined_call_operand.vmem [shape: f32[1,64], index: 13, kind: input, shape index: {}]   ;;  %s3145_s14 = inlined_call_operand.vmem [shape: f32[32,32], index: 14, kind: input, shape index: {}]   ;;  %s3146_s15 = inlined_call_operand.vmem [shape: f32[1,32], index: 15, kind: input, shape index: {}]   ;;  %s3147_s16 = inlined_call_operand.vmem [shape: f32[32,64], index: 16, kind: input, shape index: {}]   ;;  %s3148_s17 = inlined_call_operand.vmem [shape: f32[1,64], index: 17, kind: input, shape index: {}]   ;;  %s3149_s18 = inlined_call_operand.vmem [shape: f32[64,32], index: 18, kind: input, shape index: {}]   ;;  %s3150_s19 = inlined_call_operand.vmem [shape: f32[1,32], index: 19, kind: input, shape index: {}]   ;;  %s3151_s20 = inlined_call_operand.vmem [shape: f32[1,32], index: 20, kind: input, shape index: {}]   ;;  %s3152_s21 = inlined_call_operand.vmem [shape: f32[1,32], index: 21, kind: input, shape index: {}]   ;;  %s3153_s22 = inlined_call_operand.vmem [shape: f32[1,32], index: 22, kind: input, shape index: {}]   ;;  %s3154_s23 = inlined_call_operand.vmem [shape: f32[1,32], index: 23, kind: input, shape index: {}]   ;;  %s3155_s24 = inlined_call_operand.vmem [shape: f32[1,32], index: 24, kind: input, shape index: {}]   ;;  %s3156_s25 = inlined_call_operand.vmem [shape: f32[1,32], index: 25, kind: input, shape index: {}]   ;;  %s3157_s26 = inlined_call_operand.hbm [shape: f32[16,32], index: 26, kind: output, shape index: {0}]   ;;  %s3158_s27 = inlined_call_operand.vmem [shape: f32[2,8,32], index: 27, kind: output, shape index: {1}]  }
   0x1   :  { %3168 = sst [smem:[#allocation8_spill]] %s3131_s0 }
   0x2   :  { %3169 = sst [smem:[#allocation9_spill]] %s3132_s1 }
   0x3   :  { %3170 = sst [smem:[#allocation10_spill]] %s3133_s2 }
   0x4   :  { %3171 = sst [smem:[#allocation11_spill]] %s3134_s3 }
   0x5   :  { %3172 = sst [smem:[#allocation12_spill]] %s3135_s4 }
   0x6   :  { %3173 = sst [smem:[#allocation13_spill]] %s3136_s5 }
   0x7   :  { %3174 = sst [smem:[#allocation14_spill]] %s3137_s6 }
   0x8   :  { %3175 = sst [smem:[#allocation15_spill]] %s3138_s7 }
   0x9   :  { %3176 = sst [smem:[#allocation16_spill]] %s3139_s8 }
   0xa   :  { %3177 = sst [smem:[#allocation17_spill]] %s3140_s9 }
   0xb   :  { %3178 = sst [smem:[#allocation18_spill]] %s3141_s10 }
   0xc   :  { %3179 = sst [smem:[#allocation19_spill]] %s3142_s11 }
   0xd   :  { %33 = vsyncpa [#allocation3], 0 }
   0xe   :  { %34 = vsyncpa [#allocation4], 0  ;;  %s2404_s7 = smov [#allocation2]  }
   0xf   :  { %s42_s4 = sshll.u32 %s2404_s7, 4  ;;  %s43_s4 = int_to_ptr.vmem [resolvable:$true] %s42_s4 }
  0x10   :  { %s2368_s8 = scalar_lea.vmem %s43_s4, 256  ;;  %p2373_p1 = scmp.lt.s32.totalorder %s43_s4, %s43_s4 }
  0x11   :  { %p2369_p0 = scmp.ne.s32.totalorder %s43_s4, %s2368_s8  ;;  %p2374_p2 = scmp.lt.s32.totalorder %s2368_s8, %s2368_s8 }
  0x13   :  { %p2375_p3 = por %p2374_p2, %p2373_p1 }
  0x15   :  { %p2376_p4 = pnand %p2375_p3, %p2369_p0 }
  0x17   :  { %2379 = shalt.err (!%p2376_p4)
}
  0x18   :  { %s3167_s30 = smov 128   ;;  %s2406_s9 = smov 8  }
  0x19   :  { %s3180_s0 = sld [smem:[#allocation9_spill]] }
  0x1f   :  { %48 = dma.hbm_to_vmem [thread:$0]  %s3180_s0, 256, %s43_s4, [#allocation3], %s3167_s30, %s3167_s30, %s2406_s9  }
  0x20   :  { %2400 = dma.done.wait [#allocation3], 256  }
  0x21   :  { %2401 = vsyncadd [#allocation3], 4294967040  ;;  %vm115_vm0 = vcmask 261120   ;;  %s3181_s1 = sld [smem:[#allocation14_spill]]  ;;  %s2407_s6 = smov 32   ;;  %v2408_v10 = vmov 0.0  }
  0x22   :  { %s3182_s7 = sld [smem:[#allocation8_spill]]  ;;  %2121 = vmatprep.subr.mxu0 %v2408_v10  ;;  %s2409_s29 = smov 96   ;;  %vm2410_vm1 = vmmov 0   ;;  %vm456_vm2 = vcmask 130112   ;;  %vm487_vm3 = vcmask 195712   ;;  %vm518_vm4 = vcmask 261312  }
  0x23   :  { %s3183_s0 = sld [smem:[#allocation12_spill]]  ;;  %2129 = vmatprep.mubr.msk.f32.mxu0 %vm2410_vm1, %v2408_v10  ;;  %vm433_vm5 = vcmask 64512   ;;  %s2411_s5 = smov 120   ;;  %vm551_vm6 = vcmask 130048   ;;  %vm554_vm7 = vcmask 195584   ;;  %vm1811_vm8 = vcmask 523264  }
  0x24   :  { %s3185_s3 = sld [smem:[#allocation10_spill]]  ;;  %s2412_s28 = smov 112  }
  0x25   :  { %s2413_s10 = smov 64   ;;  %s3186_s11 = sld [smem:[#allocation16_spill]] }
  0x26   :  { %s3187_s2 = sld [smem:[#allocation17_spill]] }
  0x27   :  { %v107_v0 = vld [vmem:[%s3181_s1 + $0x18] sm:$0xff]  ;;  %v106_v1 = vld [vmem:[%s3181_s1 + $0x10] sm:$0xff]  ;;  %v105_v3 = vld [vmem:[%s3181_s1 + $0x8] sm:$0xff]  ;;  %s3188_s30 = sld [smem:[#allocation18_spill]] }
  0x28   :  { %2099 = vmatprep.subr.mxu1 %v107_v0  ;;  %v2571_v2 = vld [vmem:[%s3182_s7] sm:$0xff]  ;;  %v2608_v9 = vld [vmem:[%s3182_s7 + $0x8] sm:$0xff] }
  0x29   :  { %2100 = vmatpush3.msra.mxu1 %v107_v0  ;;  %2107 = vmatprep.mubr.msk.f32.mxu1 %vm115_vm0, %v2571_v2  ;;  %v2581_v4 = vld [vmem:[%s3183_s0 + $0x18] sm:$0xff]  ;;  %v2586_v5 = vld [vmem:[%s3183_s0 + $0x8] sm:$0xff]  ;;  %v104_v6 = vld [vmem:[%s3181_s1] sm:$0xff]  ;;  %s2414_s1 = smov 104  }
  0x2a   :  { %2101 = vmatprep.subr.mxu1 %v106_v1  ;;  %213 = vrot.lane.b32.xlu0 %v2581_v4, %s2407_s6  ;;  %v2598_v7 = vld [vmem:[%s3183_s0 + $0x10] sm:$0xff]  ;;  %v2603_v8 = vld [vmem:[%s3183_s0] sm:$0xff]  ;;  %s3184_s0 = sld [smem:[#allocation15_spill]]  ;;  %v198_v36 = vld [vmem:[%s3185_s3 + $0x8] sm:$0xff] }
  0x2b   :  { %2102 = vmatpush3.msra.mxu1 %v106_v1  ;;  %209 = vrot.lane.b32.xlu1 %v2586_v5, %s2407_s6  ;;  %v197_v38 = vld [vmem:[%s3185_s3] sm:$0xff]  ;;  %s3189_s3 = sld [smem:[#allocation13_spill]] }
  0x2c   :  { %2103 = vmatprep.subr.mxu1 %v105_v3 }
  0x2d   :  { %2104 = vmatpush3.msra.mxu1 %v105_v3 }
  0x2e   :  { %2105 = vmatprep.subr.mxu1 %v104_v6  ;;  %211 = vrot.lane.b32.xlu0 %v2598_v7, %s2407_s6 }
  0x2f   :  { %2106 = vmatpush3.msra.mxu1 %v104_v6  ;;  %207 = vrot.lane.b32.xlu1 %v2603_v8, %s2407_s6 }
  0x30   :  { %2108 = vmatmul.mubr.msk.f32.vlgmr.msra.gmra.mxu1 %vm115_vm0, %v2608_v9  ;;  %2110 = vmatprep.subr.mxu1 %v2408_v10  ;;  %v1962_v12 = vld [vmem:[%s3184_s0] ss:$0 sm:$0xff] }
  0x31   :  { %2118 = vmatprep.mubr.msk.f32.mxu1 %vm2410_vm1, %v2408_v10 }
  0x9c   :  { %v214_v11 = vpop.permute.xlu0 %213 }
  0x9d   :  { %v210_v20 = vpop.permute.xlu1 %209 }
  0xa0   :  { %v212_v18 = vpop.permute.xlu0 %211 }
  0xa1   :  { %v208_v24 = vpop.permute.xlu1 %207 }
  0xf0   :  { %v2109_v13 = vpop.f32.mrf.mxu1 }
  0xf1   :  { %v2621_v14 = vadd.f32 %v2109_v13, %v1962_v12 }
  0xf2   :  { %v188_v15 = vpop.f32.mrf.mxu1 }
  0xf3   :  { %v2623_v16 = vadd.f32 %v1962_v12, %v188_v15  ;;  %v226_v17 = vmul.f32 %v214_v11, %v2621_v14  ;;  %v225_v21 = vmul.f32 %v212_v18, %v2621_v14  ;;  %v224_v23 = vmul.f32 %v210_v20, %v2621_v14 }
  0xf4   :  { %v223_v26 = vmul.f32 %v208_v24, %v2621_v14 }
  0xf5   :  { %350 = vrot.lane.b32.xlu1 %v226_v17, %s2409_s29  ;;  %v222_v19 = vmul.f32 %v214_v11, %v2623_v16  ;;  %v221_v22 = vmul.f32 %v212_v18, %v2623_v16  ;;  %v220_v25 = vmul.f32 %v210_v20, %v2623_v16  ;;  %v219_v27 = vmul.f32 %v208_v24, %v2623_v16 }
  0xf7   :  { %257 = vrot.lane.b32.xlu0 %v222_v19, %s2409_s29 }
  0xf9   :  { %348 = vrot.lane.b32.xlu1 %v225_v21, %s2409_s29 }
  0xfb   :  { %255 = vrot.lane.b32.xlu0 %v221_v22, %s2409_s29 }
  0xfd   :  { %346 = vrot.lane.b32.xlu1 %v224_v23, %s2409_s29 }
  0xff   :  { %253 = vrot.lane.b32.xlu0 %v220_v25, %s2409_s29 }
 0x101   :  { %344 = vrot.lane.b32.xlu1 %v223_v26, %s2409_s29 }
 0x103   :  { %251 = vrot.lane.b32.xlu0 %v219_v27, %s2409_s29 }
 0x167   :  { %v351_v28 = vpop.permute.xlu1 %350 }
 0x168   :  { %2122 = vmatpush3.xpose.msk.msra.mxu0 %vm115_vm0, %v351_v28 }
 0x169   :  { %v258_v29 = vpop.permute.xlu0 %257  ;;  %2123 = vmatprep.subr.mxu0 %v2408_v10 }
 0x16a   :  { %2111 = vmatpush3.xpose.msk.msra.mxu1 %vm115_vm0, %v258_v29 }
 0x16b   :  { %v349_v30 = vpop.permute.xlu1 %348  ;;  %2112 = vmatprep.subr.mxu1 %v2408_v10 }
 0x16c   :  { %2124 = vmatpush3.xpose.msk.msra.mxu0 %vm115_vm0, %v349_v30 }
 0x16d   :  { %v256_v31 = vpop.permute.xlu0 %255  ;;  %2125 = vmatprep.subr.mxu0 %v2408_v10 }
 0x16e   :  { %2113 = vmatpush3.xpose.msk.msra.mxu1 %vm115_vm0, %v256_v31 }
 0x16f   :  { %v347_v32 = vpop.permute.xlu1 %346  ;;  %2114 = vmatprep.subr.mxu1 %v2408_v10 }
 0x170   :  { %2126 = vmatpush3.xpose.msk.msra.mxu0 %vm115_vm0, %v347_v32 }
 0x171   :  { %v254_v33 = vpop.permute.xlu0 %253  ;;  %2127 = vmatprep.subr.mxu0 %v2408_v10 }
 0x172   :  { %2115 = vmatpush3.xpose.msk.msra.mxu1 %vm115_vm0, %v254_v33 }
 0x173   :  { %v345_v34 = vpop.permute.xlu1 %344  ;;  %2116 = vmatprep.subr.mxu1 %v2408_v10 }
 0x174   :  { %2128 = vmatpush3.xpose.msk.msra.mxu0 %vm115_vm0, %v345_v34 }
 0x175   :  { %v252_v35 = vpop.permute.xlu0 %251  ;;  %2143 = vmatprep.subr.mxu0 %v2408_v10 }
 0x176   :  { %2117 = vmatpush3.xpose.msk.msra.mxu1 %vm115_vm0, %v252_v35 }
 0x177   :  { %2130 = vmatmul.mubr.msk.f32.vlgmr.msra.gmra.mxu0 %vm115_vm0, %v2621_v14  ;;  %2132 = vmatprep.subr.mxu1 %v2408_v10 }
 0x178   :  { %2151 = vmatprep.mubr.msk.f32.mxu0 %vm2410_vm1, %v2408_v10 }
 0x179   :  { %2119 = vmatmul.mubr.msk.f32.vlgmr.msra.gmra.mxu1 %vm115_vm0, %v2623_v16 }
 0x17a   :  { %2140 = vmatprep.mubr.msk.f32.mxu1 %vm2410_vm1, %v2408_v10 }
 0x237   :  { %v429_v37 = vpop.f32.mrf.mxu0 }
 0x238   :  { %v2675_v39 = vadd.f32 %v429_v37, %v198_v36 }
 0x239   :  { %v336_v40 = vpop.f32.mrf.mxu1  ;;  %v2131_v41 = vpop.f32.mrf.mxu0 }
 0x23a   :  { %v2677_v42 = vadd.f32 %v336_v40, %v197_v38  ;;  %v460_v43 = vsel %vm456_vm2, %v2675_v39, -inf  ;;  %v491_v44 = vsel %vm487_vm3, %v2675_v39, -inf  ;;  %v522_v50 = vsel %vm518_vm4, %v2675_v39, -inf }
 0x23b   :  { %461 = vmax.xlane.f32.xlu1 %v460_v43  ;;  %492 = vmax.xlane.f32.xlu0 %v491_v44  ;;  %v2120_v45 = vpop.f32.mrf.mxu1  ;;  %v437_v51 = vsel %vm433_vm5, %v2675_v39, -inf }
 0x23c   :  { %v519_v46 = vsel %vm518_vm4, %v2677_v42, -inf  ;;  %v457_v47 = vsel %vm456_vm2, %v2677_v42, -inf  ;;  %v488_v48 = vsel %vm487_vm3, %v2677_v42, -inf  ;;  %v434_v49 = vsel %vm433_vm5, %v2677_v42, -inf }
 0x23f   :  { %520 = vmax.xlane.f32.xlu1 %v519_v46  ;;  %458 = vmax.xlane.f32.xlu0 %v457_v47 }
 0x243   :  { %489 = vmax.xlane.f32.xlu0 %v488_v48  ;;  %435 = vmax.xlane.f32.xlu1 %v434_v49 }
 0x247   :  { %523 = vmax.xlane.f32.xlu0 %v522_v50 }
 0x24b   :  { %438 = vmax.xlane.f32.xlu0 %v437_v51 }
 0x2c4   :  { %v462_v52 = vpop.xlane.xlu1 %461  ;;  %v493_v53 = vpop.xlane.xlu0 %492 }
 0x2c5   :  { %v464_v54 = vsub.f32 %v2675_v39, %v462_v52  ;;  %v495_v55 = vsub.f32 %v2675_v39, %v493_v53 }
 0x2c7   :  { %v467_v56 = vmul.f32 1.442695, %v464_v54  ;;  %v498_v57 = vmul.f32 1.442695, %v495_v55 }
 0x2c8   :  { %v459_v58 = vpop.xlane.xlu0 %458  ;;  %v521_v59 = vpop.xlane.xlu1 %520 }
 0x2c9   :  { %2284 = vpow2.f32 %v467_v56  ;;  %v463_v60 = vsub.f32 %v2677_v42, %v459_v58  ;;  %v525_v62 = vsub.f32 %v2677_v42, %v521_v59 }
 0x2ca   :  { %2286 = vpow2.f32 %v498_v57 }
 0x2cb   :  { %v465_v61 = vmul.f32 1.442695, %v463_v60  ;;  %v527_v3 = vmul.f32 1.442695, %v525_v62 }
 0x2cc   :  { %v490_v63 = vpop.xlane.xlu0 %489  ;;  %v436_v24 = vpop.xlane.xlu1 %435 }
 0x2cd   :  { %v494_v0 = vsub.f32 %v2677_v42, %v490_v63  ;;  %2288 = vpow2.f32 %v465_v61  ;;  %v440_v33 = vsub.f32 %v2677_v42, %v436_v24 }
 0x2cf   :  { %v496_v1 = vmul.f32 1.442695, %v494_v0  ;;  %v442_v36 = vmul.f32 1.442695, %v440_v33 }
 0x2d0   :  { %v524_v6 = vpop.xlane.xlu0 %523 }
 0x2d1   :  { %v526_v11 = vsub.f32 %v2675_v39, %v524_v6  ;;  %2290 = vpow2.f32 %v496_v1 }
 0x2d2   :  { %2292 = vpow2.f32 %v527_v3 }
 0x2d3   :  { %v529_v12 = vmul.f32 1.442695, %v526_v11 }
 0x2d5   :  { %2294 = vpow2.f32 %v529_v12 }
 0x2d6   :  { %v2701_v13 = vpop.eup %2284 }
 0x2d7   :  { %v2703_v15 = vpop.eup %2286  ;;  %473 = vrot.lane.b32.xlu0 %v2701_v13, %s2411_s5 }
 0x2d8   :  { %504 = vrot.lane.b32.xlu1 %v2703_v15, %s2412_s28 }
 0x2da   :  { %v2709_v17 = vpop.eup %2288 }
 0x2db   :  { %233 = vrot.lane.b32.xlu0 %v2581_v4, %s2413_s10  ;;  %v439_v4 = vpop.xlane.xlu0 %438 }
 0x2dc   :  { %471 = vrot.lane.b32.xlu1 %v2709_v17, %s2411_s5 }
 0x2de   :  { %v2715_v18 = vpop.eup %2290 }
 0x2df   :  { %229 = vrot.lane.b32.xlu0 %v2586_v5, %s2413_s10  ;;  %v2721_v19 = vpop.eup %2292  ;;  %v441_v5 = vsub.f32 %v2675_v39, %v439_v4 }
 0x2e0   :  { %502 = vrot.lane.b32.xlu1 %v2715_v18, %s2412_s28 }
 0x2e1   :  { %v444_v21 = vmul.f32 1.442695, %v441_v5 }
 0x2e2   :  { %v2723_v20 = vpop.eup %2294 }
 0x2e3   :  { %533 = vrot.lane.b32.xlu0 %v2721_v19, %s2414_s1  ;;  %2296 = vpow2.f32 %v444_v21 }
 0x2e4   :  { %535 = vrot.lane.b32.xlu1 %v2723_v20, %s2414_s1  ;;  %2298 = vpow2.f32 %v442_v36  ;;  %v1977_v36 = vld [vmem:[%s3187_s2] ss:$0 sm:$0xff] }
 0x2e8   :  { %231 = vrot.lane.b32.xlu1 %v2598_v7, %s2413_s10 }
 0x2ec   :  { %227 = vrot.lane.b32.xlu1 %v2603_v8, %s2413_s10 }
 0x2f0   :  { %v2734_v22 = vpop.eup %2296 }
 0x2f1   :  { %v449_v23 = vsel %vm433_vm5, %v2734_v22, 0.0  ;;  %v2751_v39 = vpop.eup %2298 }
 0x2f2   :  { %v446_v40 = vsel %vm433_vm5, %v2751_v39, 0.0 }
 0x302   :  { %450 = vadd.xlane.f32.xlu0 %v449_v23 }
 0x349   :  { %v474_v25 = vpop.permute.xlu0 %473 }
 0x34a   :  { %v505_v26 = vpop.permute.xlu1 %504  ;;  %v480_v41 = vsel %vm433_vm5, %v474_v25, 0.0 }
 0x34b   :  { %v511_v42 = vsel %vm433_vm5, %v505_v26, 0.0 }
 0x34d   :  { %v234_v27 = vpop.permute.xlu0 %233 }
 0x34e   :  { %v472_v28 = vpop.permute.xlu1 %471  ;;  %v242_v7 = vmul.f32 %v234_v27, %v2623_v16  ;;  %v246_v29 = vmul.f32 %v234_v27, %v2621_v14 }
 0x34f   :  { %v477_v44 = vsel %vm433_vm5, %v472_v28, 0.0 }
 0x350   :  { %656 = vrot.lane.b32.xlu0 %v246_v29, %s2413_s10  ;;  %567 = vrot.lane.b32.xlu1 %v242_v7, %s2413_s10 }
 0x351   :  { %v230_v8 = vpop.permute.xlu0 %229 }
 0x352   :  { %v503_v30 = vpop.permute.xlu1 %502  ;;  %v240_v31 = vmul.f32 %v230_v8, %v2623_v16  ;;  %v244_v38 = vmul.f32 %v230_v8, %v2621_v14 }
 0x353   :  { %v508_v45 = vsel %vm433_vm5, %v503_v30, 0.0 }
 0x354   :  { %563 = vrot.lane.b32.xlu0 %v240_v31, %s2413_s10  ;;  %v738_v31 = vld [vmem:[%s3186_s11 + $0x18] sm:$0xff] }
 0x355   :  { %v534_v46 = vpop.permute.xlu0 %533 }
 0x356   :  { %v536_v32 = vpop.permute.xlu1 %535  ;;  %v539_v48 = vsel %vm433_vm5, %v534_v46, 0.0  ;;  %v968_v46 = vld [vmem:[%s3143_s12 + $0x10] sm:$0xff] }
 0x357   :  { %v542_v43 = vsel %vm433_vm5, %v536_v32, 0.0 }
 0x35a   :  { %v232_v34 = vpop.permute.xlu1 %231 }
 0x35b   :  { %v241_v35 = vmul.f32 %v232_v34, %v2623_v16  ;;  %v245_v37 = vmul.f32 %v232_v34, %v2621_v14 }
 0x35d   :  { %565 = vrot.lane.b32.xlu1 %v241_v35, %s2413_s10 }
 0x35e   :  { %v228_v47 = vpop.permute.xlu1 %227 }
 0x35f   :  { %v239_v49 = vmul.f32 %v228_v47, %v2623_v16  ;;  %v243_v50 = vmul.f32 %v228_v47, %v2621_v14  ;;  %v102_v47 = vld [vmem:[#allocation2] sm:$0xff] }
 0x361   :  { %654 = vrot.lane.b32.xlu1 %v245_v37, %s2413_s10 }
 0x365   :  { %652 = vrot.lane.b32.xlu1 %v244_v38, %s2413_s10 }
 0x373   :  { %447 = vadd.xlane.f32.xlu0 %v446_v40 }
 0x377   :  { %481 = vadd.xlane.f32.xlu0 %v480_v41 }
 0x37b   :  { %512 = vadd.xlane.f32.xlu0 %v511_v42 }
 0x37f   :  { %543 = vadd.xlane.f32.xlu0 %v542_v43 }
 0x389   :  { %478 = vadd.xlane.f32.xlu1 %v477_v44 }
 0x38b   :  { %v451_v51 = vpop.xlane.xlu0 %450 }
 0x38c   :  { %2300 = vrcp.f32 %v451_v51 }
 0x38d   :  { %509 = vadd.xlane.f32.xlu1 %v508_v45  ;;  %v969_v45 = vld [vmem:[%s3143_s12 + $0x18] sm:$0xff] }
 0x391   :  { %540 = vadd.xlane.f32.xlu1 %v539_v48  ;;  %v103_v48 = vld [vmem:[#allocation2 + $0x8] sm:$0xff] }
 0x395   :  { %561 = vrot.lane.b32.xlu0 %v239_v49, %s2413_s10 }
 0x399   :  { %v2301_v62 = vpop.eup %2300 }
 0x39a   :  { %v455_v4 = vmul.f32 %v2301_v62, %v2734_v22 }
 0x3a2   :  { %650 = vrot.lane.b32.xlu1 %v243_v50, %s2413_s10 }
 0x3c2   :  { %v568_v52 = vpop.permute.xlu1 %567  ;;  %v657_v53 = vpop.permute.xlu0 %656 }
 0x3c3   :  { %2133 = vmatpush3.msra.mxu1 %v568_v52  ;;  %2144 = vmatpush3.msra.mxu0 %v657_v53 }
 0x3c4   :  { %2134 = vmatprep.subr.mxu1 %v2408_v10  ;;  %2145 = vmatprep.subr.mxu0 %v2408_v10 }
 0x3c6   :  { %v564_v55 = vpop.permute.xlu0 %563 }
 0x3cf   :  { %v566_v54 = vpop.permute.xlu1 %565 }
 0x3d0   :  { %2135 = vmatpush3.msra.mxu1 %v566_v54 }
 0x3d1   :  { %2136 = vmatprep.subr.mxu1 %v2408_v10 }
 0x3d2   :  { %2137 = vmatpush3.msra.mxu1 %v564_v55 }
 0x3d3   :  { %v655_v16 = vpop.permute.xlu1 %654  ;;  %2138 = vmatprep.subr.mxu1 %v2408_v10 }
 0x3d4   :  { %2146 = vmatpush3.msra.mxu0 %v655_v16 }
 0x3d5   :  { %2147 = vmatprep.subr.mxu0 %v2408_v10 }
 0x3d7   :  { %v653_v14 = vpop.permute.xlu1 %652 }
 0x3d8   :  { %2148 = vmatpush3.msra.mxu0 %v653_v14 }
 0x3d9   :  { %2149 = vmatprep.subr.mxu0 %v2408_v10 }
 0x3fc   :  { %v448_v56 = vpop.xlane.xlu0 %447 }
 0x400   :  { %v482_v57 = vpop.xlane.xlu0 %481 }
 0x401   :  { %2302 = vrcp.f32 %v482_v57  ;;  %v877_v57 = vld [vmem:[%s3188_s30 + $0x18] sm:$0xff] }
 0x404   :  { %v513_v58 = vpop.xlane.xlu0 %512 }
 0x405   :  { %2304 = vrcp.f32 %v513_v58  ;;  %v876_v58 = vld [vmem:[%s3188_s30 + $0x10] sm:$0xff] }
 0x408   :  { %v544_v59 = vpop.xlane.xlu0 %543 }
 0x409   :  { %2306 = vrcp.f32 %v544_v59  ;;  %v875_v59 = vld [vmem:[%s3188_s30 + $0x8] sm:$0xff] }
 0x40c   :  { %v562_v60 = vpop.permute.xlu0 %561 }
 0x40d   :  { %2139 = vmatpush3.msra.mxu1 %v562_v60  ;;  %v874_v60 = vld [vmem:[%s3188_s30] sm:$0xff] }
 0x40e   :  { %v2303_v63 = vpop.eup %2302  ;;  %2154 = vmatprep.subr.mxu1 %v738_v31 }
 0x40f   :  { %v486_v6 = vmul.f32 %v2303_v63, %v2701_v13  ;;  %v2846_v63 = vld [vmem:[%s3189_s3 + $0x18] sm:$0xff] }
 0x411   :  { %v550_v21 = vsel %vm433_vm5, %v455_v4, %v486_v6  ;;  %v2873_v4 = vld [vmem:[%s3189_s3] sm:$0xff] }
 0x412   :  { %v479_v61 = vpop.xlane.xlu1 %478  ;;  %v2305_v1 = vpop.eup %2304 }
 0x413   :  { %2308 = vrcp.f32 %v479_v61  ;;  %v517_v12 = vmul.f32 %v2305_v1, %v2703_v15  ;;  %v1985_v61 = vld [vmem:[%s3144_s13] ss:$0 sm:$0xff]  ;;  %v2853_v1 = vld [vmem:[%s3189_s3 + $0x10] sm:$0xff]  ;;  %s3191_s13 = sld [smem:[#allocation11_spill]] }
 0x414   :  { %2310 = vrcp.f32 %v448_v56 }
 0x415   :  { %v553_v24 = vsel %vm551_vm6, %v550_v21, %v517_v12 }
 0x416   :  { %v510_v0 = vpop.xlane.xlu1 %509  ;;  %v2307_v3 = vpop.eup %2306 }
 0x417   :  { %2312 = vrcp.f32 %v510_v0  ;;  %v548_v5 = vmul.f32 %v2307_v3, %v2723_v20 }
 0x419   :  { %v556_v25 = vsel %vm554_vm7, %v553_v24, %v548_v5 }
 0x41a   :  { %v541_v11 = vpop.xlane.xlu1 %540 }
 0x41b   :  { %2314 = vrcp.f32 %v541_v11  ;;  %v2864_v11 = vld [vmem:[%s3189_s3 + $0x8] sm:$0xff]  ;;  %s3190_s3 = sld [smem:[#allocation19_spill]] }
 0x41e   :  { %v651_v23 = vpop.permute.xlu1 %650 }
 0x41f   :  { %2150 = vmatpush3.msra.mxu0 %v651_v23 }
 0x420   :  { %2152 = vmatmul.mubr.msk.f32.vlgmr.msra.gmra.mxu0 %vm115_vm0, %v556_v25  ;;  %v2309_v13 = vpop.eup %2308  ;;  %2165 = vmatprep.subr.mxu0 %v877_v57 }
 0x421   :  { %v2311_v26 = vpop.eup %2310  ;;  %v485_v22 = vmul.f32 %v2309_v13, %v2709_v17  ;;  %v737_v17 = vld [vmem:[%s3186_s11 + $0x10] sm:$0xff]  ;;  %2166 = vmatpush3.msra.mxu0 %v877_v57 }
 0x422   :  { %v454_v20 = vmul.f32 %v2311_v26, %v2751_v39  ;;  %2167 = vmatprep.subr.mxu0 %v876_v58 }
 0x423   :  { %2168 = vmatpush3.msra.mxu0 %v876_v58 }
 0x424   :  { %v2313_v15 = vpop.eup %2312  ;;  %v549_v29 = vsel %vm433_vm5, %v454_v20, %v485_v22  ;;  %2169 = vmatprep.subr.mxu0 %v875_v59  ;;  %v1980_v22 = vld [vmem:[%s3151_s20] ss:$0 sm:$0xff] }
 0x425   :  { %v516_v27 = vmul.f32 %v2313_v15, %v2715_v18  ;;  %v736_v18 = vld [vmem:[%s3186_s11 + $0x8] sm:$0xff]  ;;  %2170 = vmatpush3.msra.mxu0 %v875_v59 }
 0x426   :  { %2171 = vmatprep.subr.mxu0 %v874_v60 }
 0x427   :  { %v552_v8 = vsel %vm551_vm6, %v549_v29, %v516_v27  ;;  %2172 = vmatpush3.msra.mxu0 %v874_v60 }
 0x428   :  { %v2315_v28 = vpop.eup %2314  ;;  %2187 = vmatprep.subr.mxu0 %v2408_v10 }
 0x429   :  { %v547_v7 = vmul.f32 %v2315_v28, %v2721_v19  ;;  %v735_v19 = vld [vmem:[%s3186_s11] sm:$0xff] }
 0x42a   :  { %v1981_v28 = vld [vmem:[%s3152_s21] ss:$0 sm:$0xff] }
 0x42b   :  { %v555_v30 = vsel %vm554_vm7, %v552_v8, %v547_v7 }
 0x42c   :  { %2141 = vmatmul.mubr.msk.f32.vlgmr.msra.gmra.mxu1 %vm115_vm0, %v555_v30 }
 0x42d   :  { %2155 = vmatpush3.msra.mxu1 %v738_v31 }
 0x42e   :  { %2156 = vmatprep.subr.mxu1 %v737_v17 }
 0x42f   :  { %2157 = vmatpush3.msra.mxu1 %v737_v17 }
 0x430   :  { %2158 = vmatprep.subr.mxu1 %v736_v18 }
 0x431   :  { %2159 = vmatpush3.msra.mxu1 %v736_v18 }
 0x432   :  { %2160 = vmatprep.subr.mxu1 %v735_v19 }
 0x433   :  { %2161 = vmatpush3.msra.mxu1 %v735_v19 }
 0x434   :  { %2176 = vmatprep.subr.mxu1 %v969_v45 }
 0x4e0   :  { %v731_v32 = vpop.f32.mrf.mxu0 }
 0x4e2   :  { %v2153_v33 = vpop.f32.mrf.mxu0 }
 0x4ec   :  { %v642_v34 = vpop.f32.mrf.mxu1 }
 0x4ed   :  { %2162 = vmatprep.mubr.msk.f32.mxu1 %vm115_vm0, %v642_v34 }
 0x4ee   :  { %v2142_v35 = vpop.f32.mrf.mxu1  ;;  %2163 = vmatmul.mubr.msk.f32.vlgmr.msra.gmra.mxu1 %vm115_vm0, %v731_v32 }
 0x4ef   :  { %2177 = vmatpush3.msra.mxu1 %v969_v45  ;;  %2184 = vmatprep.mubr.msk.f32.mxu1 %vm115_vm0, %v102_v47  ;;  %v1982_v35 = vld [vmem:[%s3190_s3] ss:$0 sm:$0xff] }
 0x4f0   :  { %2178 = vmatprep.subr.mxu1 %v968_v46 }
 0x4f1   :  { %2179 = vmatpush3.msra.mxu1 %v968_v46 }
 0x5ae   :  { %v2164_v37 = vpop.f32.mrf.mxu1 }
 0x5af   :  { %v824_v38 = vadd.f32 %v2164_v37, %v1977_v36 }
 0x5b0   :  { %v818_v39 = vpop.f32.mrf.mxu1 }
 0x5b1   :  { %v819_v40 = vadd.f32 %v1977_v36, %v818_v39  ;;  %v828_v41 = vadd.f32 %v824_v38, %v2608_v9  ;;  %v967_v9 = vld [vmem:[%s3143_s12 + $0x8] sm:$0xff] }
 0x5b2   :  { %2180 = vmatprep.subr.mxu1 %v967_v9 }
 0x5b3   :  { %v834_v42 = vsel %vm115_vm0, %v828_v41, 0.0  ;;  %v827_v43 = vadd.f32 %v819_v40, %v2571_v2  ;;  %v966_v2 = vld [vmem:[%s3143_s12] sm:$0xff]  ;;  %2181 = vmatpush3.msra.mxu1 %v967_v9  ;;  %v1059_v40 = vld [vmem:[%s3191_s13 + $0x8] sm:$0xff] }
 0x5b4   :  { %835 = vadd.xlane.f32.xlu1 %v834_v42  ;;  %2182 = vmatprep.subr.mxu1 %v966_v2  ;;  %v1058_v42 = vld [vmem:[%s3191_s13] sm:$0xff] }
 0x5b5   :  { %v831_v44 = vsel %vm115_vm0, %v827_v43, 0.0  ;;  %2183 = vmatpush3.msra.mxu1 %v966_v2 }
 0x5b6   :  { %832 = vadd.xlane.f32.xlu0 %v831_v44  ;;  %2185 = vmatmul.mubr.msk.f32.vlgmr.msra.gmra.mxu1 %vm115_vm0, %v103_v48 }
 0x5b7   :  { %2198 = vmatprep.subr.mxu1 %v2408_v10  ;;  %2206 = vmatprep.mubr.msk.f32.mxu1 %vm2410_vm1, %v2408_v10 }
 0x63d   :  { %v836_v49 = vpop.xlane.xlu1 %835 }
 0x63e   :  { %v839_v50 = vmul.f32 0.03125, %v836_v49 }
 0x63f   :  { %v833_v51 = vpop.xlane.xlu0 %832 }
 0x640   :  { %v838_v52 = vmul.f32 0.03125, %v833_v51  ;;  %v841_v53 = vsub.f32 %v828_v41, %v839_v50 }
 0x642   :  { %v840_v54 = vsub.f32 %v827_v43, %v838_v52  ;;  %v843_v14 = vmul.f32 %v841_v53, %v841_v53 }
 0x644   :  { %v842_v55 = vmul.f32 %v840_v54, %v840_v54  ;;  %v847_v56 = vsel %vm115_vm0, %v843_v14, 0.0 }
 0x646   :  { %v844_v16 = vsel %vm115_vm0, %v842_v55, 0.0 }
 0x647   :  { %845 = vadd.xlane.f32.xlu0 %v844_v16 }
 0x64b   :  { %848 = vadd.xlane.f32.xlu0 %v847_v56 }
 0x676   :  { %v2186_v62 = vpop.f32.mrf.mxu1 }
 0x677   :  { %v2848_v0 = vadd.f32 %v2186_v62, %v1985_v61 }
 0x678   :  { %v1049_v20 = vpop.f32.mrf.mxu1 }
 0x679   :  { %v1071_v3 = vmul.f32 %v2846_v63, %v2848_v0  ;;  %v1070_v6 = vmul.f32 %v2853_v1, %v2848_v0  ;;  %v1069_v12 = vmul.f32 %v2864_v11, %v2848_v0  ;;  %v1068_v5 = vmul.f32 %v2873_v4, %v2848_v0 }
 0x67a   :  { %v2887_v8 = vadd.f32 %v1985_v61, %v1049_v20 }
 0x67b   :  { %2199 = vmatpush3.xpose.msk.msra.mxu1 %vm115_vm0, %v1071_v3 }
 0x67c   :  { %2200 = vmatprep.subr.mxu1 %v2408_v10  ;;  %v1067_v18 = vmul.f32 %v2846_v63, %v2887_v8  ;;  %v1066_v32 = vmul.f32 %v2853_v1, %v2887_v8  ;;  %v1065_v33 = vmul.f32 %v2864_v11, %v2887_v8  ;;  %v1064_v34 = vmul.f32 %v2873_v4, %v2887_v8 }
 0x67f   :  { %2201 = vmatpush3.xpose.msk.msra.mxu1 %vm115_vm0, %v1070_v6 }
 0x680   :  { %2202 = vmatprep.subr.mxu1 %v2408_v10 }
 0x683   :  { %2203 = vmatpush3.xpose.msk.msra.mxu1 %vm115_vm0, %v1069_v12 }
 0x684   :  { %2204 = vmatprep.subr.mxu1 %v2408_v10 }
 0x687   :  { %2205 = vmatpush3.xpose.msk.msra.mxu1 %vm115_vm0, %v1068_v5 }
 0x688   :  { %2220 = vmatprep.subr.mxu1 %v2408_v10 }
 0x6d0   :  { %v846_v21 = vpop.xlane.xlu0 %845 }
 0x6d1   :  { %v850_v23 = vmul.f32 0.03125, %v846_v21 }
 0x6d3   :  { %v852_v24 = vadd.f32 1e-05, %v850_v23 }
 0x6d4   :  { %v849_v25 = vpop.xlane.xlu0 %848 }
 0x6d5   :  { %2316 = vrsqrt.f32 %v852_v24  ;;  %v851_v13 = vmul.f32 0.03125, %v849_v25 }
 0x6d7   :  { %v853_v26 = vadd.f32 1e-05, %v851_v13 }
 0x6d9   :  { %2318 = vrsqrt.f32 %v853_v26 }
 0x6e2   :  { %v2317_v15 = vpop.eup %2316 }
 0x6e3   :  { %v856_v27 = vmul.f32 %v2317_v15, %v840_v54 }
 0x6e5   :  { %v864_v7 = vmul.f32 %v1980_v22, %v856_v27 }
 0x6e6   :  { %v2319_v29 = vpop.eup %2318 }
 0x6e7   :  { %v857_v30 = vmul.f32 %v2319_v29, %v841_v53  ;;  %v2889_v31 = vadd.f32 %v1981_v28, %v864_v7 }
 0x6e9   :  { %v865_v17 = vmul.f32 %v1980_v22, %v857_v30  ;;  %2173 = vmatprep.mubr.msk.f32.mxu0 %vm115_vm0, %v2889_v31 }
 0x6eb   :  { %v2895_v19 = vadd.f32 %v1981_v28, %v865_v17 }
 0x6ed   :  { %2174 = vmatmul.mubr.msk.f32.vlgmr.msra.gmra.mxu0 %vm115_vm0, %v2895_v19 }
 0x6ee   :  { %2188 = vmatpush3.xpose.msk.msra.mxu0 %vm115_vm0, %v1067_v18  ;;  %2195 = vmatprep.mubr.msk.f32.mxu0 %vm2410_vm1, %v2408_v10 }
 0x6ef   :  { %2189 = vmatprep.subr.mxu0 %v2408_v10 }
 0x6f2   :  { %2190 = vmatpush3.xpose.msk.msra.mxu0 %vm115_vm0, %v1066_v32 }
 0x6f3   :  { %2191 = vmatprep.subr.mxu0 %v2408_v10 }
 0x6f6   :  { %2192 = vmatpush3.xpose.msk.msra.mxu0 %vm115_vm0, %v1065_v33 }
 0x6f7   :  { %2193 = vmatprep.subr.mxu0 %v2408_v10 }
 0x6fa   :  { %2194 = vmatpush3.xpose.msk.msra.mxu0 %vm115_vm0, %v1064_v34 }
 0x6fb   :  { %2209 = vmatprep.subr.mxu0 %v2408_v10 }
 0x7ad   :  { %v2175_v36 = vpop.f32.mrf.mxu0 }
 0x7ae   :  { %v963_v37 = vadd.f32 %v2175_v36, %v1982_v35 }
 0x7af   :  { %v957_v38 = vpop.f32.mrf.mxu0 }
 0x7b0   :  { %v958_v39 = vadd.f32 %v1982_v35, %v957_v38  ;;  %2207 = vmatmul.mubr.msk.f32.vlgmr.msra.gmra.mxu1 %vm115_vm0, %v963_v37 }
 0x7b1   :  { %2228 = vmatprep.mubr.msk.f32.mxu1 %vm2410_vm1, %v2408_v10 }
 0x7b2   :  { %2196 = vmatmul.mubr.msk.f32.vlgmr.msra.gmra.mxu0 %vm115_vm0, %v958_v39 }
 0x7b3   :  { %2217 = vmatprep.mubr.msk.f32.mxu0 %vm2410_vm1, %v2408_v10 }
 0x870   :  { %v1262_v41 = vpop.f32.mrf.mxu1 }
 0x871   :  { %v1263_v43 = vadd.f32 %v1262_v41, %v1059_v40 }
 0x872   :  { %v1177_v44 = vpop.f32.mrf.mxu0  ;;  %v2208_v45 = vpop.f32.mrf.mxu1 }
 0x873   :  { %v2930_v46 = vadd.f32 %v1177_v44, %v1058_v42  ;;  %v1291_v47 = vsel %vm456_vm2, %v1263_v43, -inf  ;;  %v1321_v48 = vsel %vm487_vm3, %v1263_v43, -inf  ;;  %v1351_v50 = vsel %vm518_vm4, %v1263_v43, -inf }
 0x874   :  { %1292 = vmax.xlane.f32.xlu0 %v1291_v47  ;;  %v2197_v9 = vpop.f32.mrf.mxu0  ;;  %v1269_v52 = vsel %vm433_vm5, %v1263_v43, -inf }
 0x875   :  { %v1288_v2 = vsel %vm456_vm2, %v2930_v46, -inf  ;;  %v1318_v49 = vsel %vm487_vm3, %v2930_v46, -inf  ;;  %v1348_v51 = vsel %vm518_vm4, %v2930_v46, -inf  ;;  %v1266_v53 = vsel %vm433_vm5, %v2930_v46, -inf }
 0x876   :  { %1289 = vmax.xlane.f32.xlu1 %v1288_v2 }
 0x878   :  { %1322 = vmax.xlane.f32.xlu0 %v1321_v48 }
 0x87a   :  { %1319 = vmax.xlane.f32.xlu1 %v1318_v49 }
 0x87c   :  { %1352 = vmax.xlane.f32.xlu0 %v1351_v50 }
 0x87e   :  { %1349 = vmax.xlane.f32.xlu1 %v1348_v51 }
 0x880   :  { %1270 = vmax.xlane.f32.xlu0 %v1269_v52 }
 0x882   :  { %1267 = vmax.xlane.f32.xlu1 %v1266_v53 }
 0x8fd   :  { %v1293_v54 = vpop.xlane.xlu0 %1292 }
 0x8fe   :  { %v1295_v55 = vsub.f32 %v1263_v43, %v1293_v54 }
 0x8ff   :  { %v1290_v16 = vpop.xlane.xlu1 %1289 }
 0x900   :  { %v1298_v14 = vmul.f32 1.442695, %v1295_v55  ;;  %v1294_v57 = vsub.f32 %v2930_v46, %v1290_v16 }
 0x901   :  { %v1323_v56 = vpop.xlane.xlu0 %1322 }
 0x902   :  { %2320 = vpow2.f32 %v1298_v14  ;;  %v1325_v58 = vsub.f32 %v1263_v43, %v1323_v56  ;;  %v1296_v62 = vmul.f32 1.442695, %v1294_v57 }
 0x903   :  { %v1320_v59 = vpop.xlane.xlu1 %1319 }
 0x904   :  { %v1328_v60 = vmul.f32 1.442695, %v1325_v58  ;;  %v1324_v61 = vsub.f32 %v2930_v46, %v1320_v59 }
 0x905   :  { %v1353_v3 = vpop.xlane.xlu0 %1352 }
 0x906   :  { %2322 = vpow2.f32 %v1328_v60  ;;  %v1326_v5 = vmul.f32 1.442695, %v1324_v61  ;;  %v1355_v21 = vsub.f32 %v1263_v43, %v1353_v3 }
 0x907   :  { %v1350_v6 = vpop.xlane.xlu1 %1349  ;;  %2324 = vpow2.f32 %v1296_v62 }
 0x908   :  { %v1354_v12 = vsub.f32 %v2930_v46, %v1350_v6  ;;  %2326 = vpow2.f32 %v1326_v5  ;;  %v1358_v24 = vmul.f32 1.442695, %v1355_v21 }
 0x909   :  { %v1271_v27 = vpop.xlane.xlu0 %1270 }
 0x90a   :  { %v1356_v23 = vmul.f32 1.442695, %v1354_v12 }
 0x90b   :  { %v1268_v29 = vpop.xlane.xlu1 %1267 }
 0x90c   :  { %2328 = vpow2.f32 %v1356_v23  ;;  %v1272_v37 = vsub.f32 %v2930_v46, %v1268_v29 }
 0x90d   :  { %2330 = vpow2.f32 %v1358_v24 }
 0x90e   :  { %v1274_v39 = vmul.f32 1.442695, %v1272_v37 }
 0x90f   :  { %v2947_v25 = vpop.eup %2320 }
 0x910   :  { %1304 = vrot.lane.b32.xlu0 %v2947_v25, %s2411_s5 }
 0x913   :  { %v2951_v13 = vpop.eup %2322 }
 0x914   :  { %1082 = vrot.lane.b32.xlu0 %v2846_v63, %s2407_s6  ;;  %1334 = vrot.lane.b32.xlu1 %v2951_v13, %s2412_s28  ;;  %v2957_v26 = vpop.eup %2324 }
 0x915   :  { %v2963_v15 = vpop.eup %2326 }
 0x918   :  { %1078 = vrot.lane.b32.xlu0 %v2864_v11, %s2407_s6  ;;  %1302 = vrot.lane.b32.xlu1 %v2957_v26, %s2411_s5  ;;  %v1273_v11 = vsub.f32 %v1263_v43, %v1271_v27  ;;  %s2415_s5 = smov [#allocation5]  }
 0x919   :  { %v2965_v22 = vpop.eup %2328 }
 0x91a   :  { %v2971_v63 = vpop.eup %2330  ;;  %v1276_v20 = vmul.f32 1.442695, %v1273_v11 }
 0x91c   :  { %1362 = vrot.lane.b32.xlu0 %v2965_v22, %s2414_s1  ;;  %1332 = vrot.lane.b32.xlu1 %v2963_v15, %s2412_s28  ;;  %2332 = vpow2.f32 %v1276_v20  ;;  %s1946_s28 = sshll.u32 %s2415_s5, 4  ;;  %s1947_s28 = int_to_ptr.vmem [resolvable:$true] %s1946_s28 }
 0x91d   :  { %2334 = vpow2.f32 %v1274_v39  ;;  %v2000_v39 = vld [vmem:[%s3146_s15] ss:$0 sm:$0xff]  ;;  %p2385_p6 = scmp.lt.s32.totalorder %s1947_s28, %s1947_s28 }
 0x920   :  { %1364 = vrot.lane.b32.xlu1 %v2971_v63, %s2414_s1  ;;  %s2380_s1 = scalar_lea.vmem %s1947_s28, 256 }
 0x921   :  { %p2381_p5 = scmp.ne.s32.totalorder %s1947_s28, %s2380_s1  ;;  %p2386_p7 = scmp.lt.s32.totalorder %s2380_s1, %s2380_s1 }
 0x923   :  { %p2387_p8 = por %p2386_p7, %p2385_p6 }
 0x924   :  { %1080 = vrot.lane.b32.xlu1 %v2853_v1, %s2407_s6 }
 0x925   :  { %p2388_p9 = pnand %p2387_p8, %p2381_p5 }
 0x928   :  { %1076 = vrot.lane.b32.xlu1 %v2873_v4, %s2407_s6 }
 0x929   :  { %v2979_v28 = vpop.eup %2332 }
 0x92a   :  { %v1281_v7 = vsel %vm433_vm5, %v2979_v28, 0.0  ;;  %v2996_v43 = vpop.eup %2334 }
 0x92b   :  { %v1278_v44 = vsel %vm433_vm5, %v2996_v43, 0.0 }
 0x93b   :  { %1282 = vadd.xlane.f32.xlu0 %v1281_v7 }
 0x982   :  { %v1305_v30 = vpop.permute.xlu0 %1304 }
 0x983   :  { %v1311_v45 = vsel %vm433_vm5, %v1305_v30, 0.0 }
 0x986   :  { %v1083_v17 = vpop.permute.xlu0 %1082  ;;  %v1335_v18 = vpop.permute.xlu1 %1334 }
 0x987   :  { %v1091_v32 = vmul.f32 %v1083_v17, %v2887_v8  ;;  %v1095_v33 = vmul.f32 %v1083_v17, %v2848_v0  ;;  %v1341_v46 = vsel %vm433_vm5, %v1335_v18, 0.0 }
 0x989   :  { %1483 = vrot.lane.b32.xlu0 %v1095_v33, %s2409_s29  ;;  %1394 = vrot.lane.b32.xlu1 %v1091_v32, %s2409_s29 }
 0x98a   :  { %v1079_v1 = vpop.permute.xlu0 %1078  ;;  %v1303_v4 = vpop.permute.xlu1 %1302 }
 0x98b   :  { %v1089_v34 = vmul.f32 %v1079_v1, %v2887_v8  ;;  %v1093_v42 = vmul.f32 %v1079_v1, %v2848_v0  ;;  %v1308_v9 = vsel %vm433_vm5, %v1303_v4, 0.0 }
 0x98d   :  { %1390 = vrot.lane.b32.xlu0 %v1089_v34, %s2409_s29  ;;  %v1562_v34 = vld [vmem:[%s3145_s14] sm:$0xff] }
 0x98e   :  { %v1333_v35 = vpop.permute.xlu1 %1332  ;;  %v1363_v48 = vpop.permute.xlu0 %1362 }
 0x98f   :  { %v1338_v2 = vsel %vm433_vm5, %v1333_v35, 0.0  ;;  %v1368_v51 = vsel %vm433_vm5, %v1363_v48, 0.0 }
 0x992   :  { %v1365_v36 = vpop.permute.xlu1 %1364 }
 0x993   :  { %v1371_v47 = vsel %vm433_vm5, %v1365_v36, 0.0 }
 0x996   :  { %v1081_v38 = vpop.permute.xlu1 %1080 }
 0x997   :  { %v1090_v40 = vmul.f32 %v1081_v38, %v2887_v8  ;;  %v1094_v41 = vmul.f32 %v1081_v38, %v2848_v0 }
 0x999   :  { %1392 = vrot.lane.b32.xlu1 %v1090_v40, %s2409_s29 }
 0x99a   :  { %v1077_v49 = vpop.permute.xlu1 %1076 }
 0x99b   :  { %v1088_v50 = vmul.f32 %v1077_v49, %v2887_v8  ;;  %v1092_v52 = vmul.f32 %v1077_v49, %v2848_v0 }
 0x99d   :  { %1481 = vrot.lane.b32.xlu1 %v1094_v41, %s2409_s29 }
 0x9a1   :  { %1479 = vrot.lane.b32.xlu1 %v1093_v42, %s2409_s29 }
 0x9ac   :  { %1279 = vadd.xlane.f32.xlu0 %v1278_v44 }
 0x9b0   :  { %1312 = vadd.xlane.f32.xlu0 %v1311_v45 }
 0x9b4   :  { %1342 = vadd.xlane.f32.xlu0 %v1341_v46 }
 0x9b8   :  { %1372 = vadd.xlane.f32.xlu0 %v1371_v47 }
 0x9c4   :  { %v1283_v53 = vpop.xlane.xlu0 %1282 }
 0x9c5   :  { %1309 = vadd.xlane.f32.xlu1 %v1308_v9 }
 0x9c9   :  { %1339 = vadd.xlane.f32.xlu1 %v1338_v2 }
 0x9cd   :  { %1369 = vadd.xlane.f32.xlu1 %v1368_v51 }
 0x9ce   :  { %1388 = vrot.lane.b32.xlu0 %v1088_v50, %s2409_s29 }
 0x9de   :  { %1477 = vrot.lane.b32.xlu1 %v1092_v52, %s2409_s29 }
 0x9fb   :  { %v1484_v54 = vpop.permute.xlu0 %1483  ;;  %v1395_v55 = vpop.permute.xlu1 %1394 }
 0x9fc   :  { %2210 = vmatpush3.msra.mxu0 %v1395_v55  ;;  %2221 = vmatpush3.msra.mxu1 %v1484_v54  ;;  %v1704_v55 = vld [vmem:[%s3147_s16 + $0x10] sm:$0xff] }
 0x9fd   :  { %2211 = vmatprep.subr.mxu0 %v2408_v10  ;;  %2222 = vmatprep.subr.mxu1 %v2408_v10 }
 0x9ff   :  { %v1391_v8 = vpop.permute.xlu0 %1390 }
 0xa0b   :  { %v1393_v16 = vpop.permute.xlu1 %1392 }
 0xa0c   :  { %2212 = vmatpush3.msra.mxu0 %v1393_v16  ;;  %v1703_v16 = vld [vmem:[%s3147_s16 + $0x8] sm:$0xff] }
 0xa0d   :  { %2213 = vmatprep.subr.mxu0 %v2408_v10 }
 0xa0e   :  { %2214 = vmatpush3.msra.mxu0 %v1391_v8  ;;  %v1702_v8 = vld [vmem:[%s3147_s16] sm:$0xff] }
 0xa0f   :  { %v1482_v14 = vpop.permute.xlu1 %1481  ;;  %2215 = vmatprep.subr.mxu0 %v2408_v10 }
 0xa10   :  { %2223 = vmatpush3.msra.mxu1 %v1482_v14  ;;  %v1803_v14 = vld [vmem:[%s3149_s18 + $0x38] sm:$0xff] }
 0xa11   :  { %2224 = vmatprep.subr.mxu1 %v2408_v10 }
 0xa13   :  { %v1480_v0 = vpop.permute.xlu1 %1479 }
 0xa14   :  { %2225 = vmatpush3.msra.mxu1 %v1480_v0  ;;  %v1802_v0 = vld [vmem:[%s3149_s18 + $0x30] sm:$0xff] }
 0xa15   :  { %2226 = vmatprep.subr.mxu1 %v2408_v10 }
 0xa35   :  { %v1280_v56 = vpop.xlane.xlu0 %1279 }
 0xa39   :  { %v1313_v57 = vpop.xlane.xlu0 %1312 }
 0xa3a   :  { %2336 = vrcp.f32 %v1313_v57  ;;  %v1800_v57 = vld [vmem:[%s3149_s18 + $0x20] sm:$0xff] }
 0xa3b   :  { %2338 = vrcp.f32 %v1283_v53 }
 0xa3d   :  { %v1343_v58 = vpop.xlane.xlu0 %1342 }
 0xa3e   :  { %2340 = vrcp.f32 %v1343_v58 }
 0xa41   :  { %v1373_v59 = vpop.xlane.xlu0 %1372 }
 0xa42   :  { %2342 = vrcp.f32 %v1373_v59 }
 0xa45   :  { %v1389_v60 = vpop.permute.xlu0 %1388 }
 0xa46   :  { %2216 = vmatpush3.msra.mxu0 %v1389_v60 }
 0xa47   :  { %v2337_v61 = vpop.eup %2336 }
 0xa48   :  { %v2339_v62 = vpop.eup %2338  ;;  %v1317_v6 = vmul.f32 %v2337_v61, %v2947_v25 }
 0xa49   :  { %v1287_v5 = vmul.f32 %v2339_v62, %v2979_v28 }
 0xa4b   :  { %v2341_v3 = vpop.eup %2340  ;;  %v1379_v24 = vsel %vm433_vm5, %v1287_v5, %v1317_v6 }
 0xa4c   :  { %v1347_v12 = vmul.f32 %v2341_v3, %v2951_v13 }
 0xa4e   :  { %v1310_v10 = vpop.xlane.xlu1 %1309  ;;  %v1381_v27 = vsel %vm551_vm6, %v1379_v24, %v1347_v12  ;;  %v2003_v12 = vld [vmem:[%s3153_s22] ss:$0 sm:$0xff] }
 0xa4f   :  { %v2343_v21 = vpop.eup %2342  ;;  %2344 = vrcp.f32 %v1310_v10  ;;  %v2004_v10 = vld [vmem:[%s3154_s23] ss:$0 sm:$0xff] }
 0xa50   :  { %v1377_v23 = vmul.f32 %v2343_v21, %v2971_v63  ;;  %2346 = vrcp.f32 %v1280_v56  ;;  %v1801_v56 = vld [vmem:[%s3149_s18 + $0x28] sm:$0xff] }
 0xa52   :  { %v1340_v11 = vpop.xlane.xlu1 %1339  ;;  %v1383_v20 = vsel %vm554_vm7, %v1381_v27, %v1377_v23 }
 0xa53   :  { %2348 = vrcp.f32 %v1340_v11  ;;  %1701 = vst.msk [vmem:[%s3158_s27 + $0x8] sm:$0xff] %vm115_vm0, %v1383_v20 }
 0xa56   :  { %v1370_v25 = vpop.xlane.xlu1 %1369 }
 0xa57   :  { %2350 = vrcp.f32 %v1370_v25  ;;  %v1799_v25 = vld [vmem:[%s3149_s18 + $0x18] sm:$0xff] }
 0xa5a   :  { %v1478_v13 = vpop.permute.xlu1 %1477 }
 0xa5b   :  { %2227 = vmatpush3.msra.mxu1 %v1478_v13  ;;  %v1798_v13 = vld [vmem:[%s3149_s18 + $0x10] sm:$0xff] }
 0xa5c   :  { %2229 = vmatmul.mubr.msk.f32.vlgmr.msra.gmra.mxu1 %vm115_vm0, %v1383_v20  ;;  %v2345_v63 = vpop.eup %2344 }
 0xa5d   :  { %v2347_v28 = vpop.eup %2346  ;;  %v1315_v29 = vmul.f32 %v2345_v63, %v2957_v26  ;;  %v1565_v26 = vld [vmem:[%s3145_s14 + $0x18] sm:$0xff]  ;;  %v1797_v63 = vld [vmem:[%s3149_s18 + $0x8] sm:$0xff] }
 0xa5e   :  { %v1285_v17 = vmul.f32 %v2347_v28, %v2996_v43  ;;  %2231 = vmatprep.subr.mxu0 %v1565_v26  ;;  %v1796_v28 = vld [vmem:[%s3149_s18] sm:$0xff] }
 0xa60   :  { %v2349_v7 = vpop.eup %2348  ;;  %v1378_v33 = vsel %vm433_vm5, %v1285_v17, %v1315_v29 }
 0xa61   :  { %v1345_v30 = vmul.f32 %v2349_v7, %v2963_v15  ;;  %v1564_v15 = vld [vmem:[%s3145_s14 + $0x10] sm:$0xff]  ;;  %v2005_v7 = vld [vmem:[%s3148_s17] ss:$0 sm:$0xff] }
 0xa63   :  { %v1380_v1 = vsel %vm551_vm6, %v1378_v33, %v1345_v30 }
 0xa64   :  { %v2351_v18 = vpop.eup %2350 }
 0xa65   :  { %v1375_v32 = vmul.f32 %v2351_v18, %v2965_v22  ;;  %v1563_v22 = vld [vmem:[%s3145_s14 + $0x8] sm:$0xff] }
 0xa67   :  { %v1382_v4 = vsel %vm554_vm7, %v1380_v1, %v1375_v32  ;;  %v2008_v1 = vld [vmem:[%s3150_s19] ss:$0 sm:$0xff] }
 0xa68   :  { %2218 = vmatmul.mubr.msk.f32.vlgmr.msra.gmra.mxu0 %vm115_vm0, %v1382_v4  ;;  %1700 = vst.msk [vmem:[%s3158_s27] sm:$0xff] %vm115_vm0, %v1382_v4 }
 0xa69   :  { %2232 = vmatpush3.msra.mxu0 %v1565_v26 }
 0xa6a   :  { %2233 = vmatprep.subr.mxu0 %v1564_v15 }
 0xa6b   :  { %2234 = vmatpush3.msra.mxu0 %v1564_v15 }
 0xa6c   :  { %2235 = vmatprep.subr.mxu0 %v1563_v22 }
 0xa6d   :  { %2236 = vmatpush3.msra.mxu0 %v1563_v22 }
 0xa6e   :  { %2237 = vmatprep.subr.mxu0 %v1562_v34 }
 0xa6f   :  { %2238 = vmatpush3.msra.mxu0 %v1562_v34 }
 0xa70   :  { %2253 = vmatprep.subr.mxu0 %v1803_v14 }
 0xb1c   :  { %v1558_v35 = vpop.f32.mrf.mxu1 }
 0xb1e   :  { %v2230_v36 = vpop.f32.mrf.mxu1 }
 0xb28   :  { %v1469_v37 = vpop.f32.mrf.mxu0 }
 0xb29   :  { %2239 = vmatprep.mubr.msk.f32.mxu0 %vm115_vm0, %v1469_v37 }
 0xb2a   :  { %v2219_v38 = vpop.f32.mrf.mxu0  ;;  %2240 = vmatmul.mubr.msk.f32.vlgmr.msra.gmra.mxu0 %vm115_vm0, %v1558_v35 }
 0xb2b   :  { %2254 = vmatpush3.msra.mxu0 %v1803_v14 }
 0xb2c   :  { %2255 = vmatprep.subr.mxu0 %v1802_v0 }
 0xb2d   :  { %2256 = vmatpush3.msra.mxu0 %v1802_v0 }
 0xb2e   :  { %2257 = vmatprep.subr.mxu0 %v1801_v56 }
 0xb2f   :  { %2258 = vmatpush3.msra.mxu0 %v1801_v56 }
 0xb30   :  { %2259 = vmatprep.subr.mxu0 %v1800_v57 }
 0xb31   :  { %2260 = vmatpush3.msra.mxu0 %v1800_v57 }
 0xb32   :  { %2261 = vmatprep.subr.mxu0 %v1799_v25 }
 0xb33   :  { %2262 = vmatpush3.msra.mxu0 %v1799_v25 }
 0xb34   :  { %2263 = vmatprep.subr.mxu0 %v1798_v13 }
 0xb35   :  { %2264 = vmatpush3.msra.mxu0 %v1798_v13 }
 0xb36   :  { %2265 = vmatprep.subr.mxu0 %v1797_v63 }
 0xb37   :  { %2266 = vmatpush3.msra.mxu0 %v1797_v63 }
 0xb38   :  { %2267 = vmatprep.subr.mxu0 %v1796_v28 }
 0xb39   :  { %2268 = vmatpush3.msra.mxu0 %v1796_v28 }
 0xbea   :  { %v2241_v40 = vpop.f32.mrf.mxu0 }
 0xbeb   :  { %v1651_v41 = vadd.f32 %v2241_v40, %v2000_v39 }
 0xbec   :  { %v1645_v42 = vpop.f32.mrf.mxu0 }
 0xbed   :  { %v1646_v43 = vadd.f32 %v2000_v39, %v1645_v42  ;;  %v1655_v44 = vadd.f32 %v1651_v41, %v2895_v19 }
 0xbef   :  { %v1661_v45 = vsel %vm115_vm0, %v1655_v44, 0.0  ;;  %v1654_v46 = vadd.f32 %v1646_v43, %v2889_v31  ;;  %v1705_v31 = vld [vmem:[%s3147_s16 + $0x18] sm:$0xff] }
 0xbf0   :  { %1662 = vadd.xlane.f32.xlu1 %v1661_v45  ;;  %2242 = vmatprep.subr.mxu1 %v1705_v31 }
 0xbf1   :  { %v1658_v47 = vsel %vm115_vm0, %v1654_v46, 0.0  ;;  %2243 = vmatpush3.msra.mxu1 %v1705_v31  ;;  %v2012_v31 = vld [vmem:[%s3156_s25] ss:$0 sm:$0xff] }
 0xbf2   :  { %1659 = vadd.xlane.f32.xlu0 %v1658_v47  ;;  %2244 = vmatprep.subr.mxu1 %v1704_v55 }
 0xbf3   :  { %2245 = vmatpush3.msra.mxu1 %v1704_v55 }
 0xbf4   :  { %2246 = vmatprep.subr.mxu1 %v1703_v16 }
 0xbf5   :  { %2247 = vmatpush3.msra.mxu1 %v1703_v16 }
 0xbf6   :  { %2248 = vmatprep.subr.mxu1 %v1702_v8 }
 0xbf7   :  { %2249 = vmatpush3.msra.mxu1 %v1702_v8 }
 0xc79   :  { %v1663_v9 = vpop.xlane.xlu1 %1662 }
 0xc7a   :  { %v1665_v2 = vmul.f32 0.03125, %v1663_v9 }
 0xc7b   :  { %v1660_v48 = vpop.xlane.xlu0 %1659 }
 0xc7c   :  { %v1664_v49 = vmul.f32 0.03125, %v1660_v48  ;;  %v1667_v50 = vsub.f32 %v1655_v44, %v1665_v2 }
 0xc7e   :  { %v1666_v51 = vsub.f32 %v1654_v46, %v1664_v49  ;;  %v1669_v54 = vmul.f32 %v1667_v50, %v1667_v50 }
 0xc80   :  { %v1668_v52 = vmul.f32 %v1666_v51, %v1666_v51  ;;  %v1673_v19 = vsel %vm115_vm0, %v1669_v54, 0.0 }
 0xc82   :  { %v1670_v53 = vsel %vm115_vm0, %v1668_v52, 0.0 }
 0xc83   :  { %1671 = vadd.xlane.f32.xlu0 %v1670_v53  ;;  %v2011_v53 = vld [vmem:[%s3155_s24] ss:$0 sm:$0xff] }
 0xc87   :  { %1674 = vadd.xlane.f32.xlu0 %v1673_v19 }
 0xd0c   :  { %v1672_v58 = vpop.xlane.xlu0 %1671 }
 0xd0d   :  { %v1676_v59 = vmul.f32 0.03125, %v1672_v58 }
 0xd0f   :  { %v1678_v60 = vadd.f32 1e-05, %v1676_v59 }
 0xd10   :  { %v1675_v61 = vpop.xlane.xlu0 %1674 }
 0xd11   :  { %2352 = vrsqrt.f32 %v1678_v60  ;;  %v1677_v62 = vmul.f32 0.03125, %v1675_v61 }
 0xd13   :  { %v1679_v3 = vadd.f32 1e-05, %v1677_v62 }
 0xd15   :  { %2354 = vrsqrt.f32 %v1679_v3 }
 0xd1e   :  { %v2353_v6 = vpop.eup %2352 }
 0xd1f   :  { %v1682_v5 = vmul.f32 %v2353_v6, %v1666_v51 }
 0xd21   :  { %v1690_v21 = vmul.f32 %v2003_v12, %v1682_v5 }
 0xd22   :  { %v2355_v23 = vpop.eup %2354 }
 0xd23   :  { %v1683_v24 = vmul.f32 %v2355_v23, %v1667_v50  ;;  %v1698_v27 = vadd.f32 %v2004_v10, %v1690_v21 }
 0xd25   :  { %v1691_v11 = vmul.f32 %v2003_v12, %v1683_v24  ;;  %2250 = vmatprep.mubr.msk.f32.mxu1 %vm115_vm0, %v1698_v27 }
 0xd27   :  { %v1699_v20 = vadd.f32 %v2004_v10, %v1691_v11 }
 0xd29   :  { %2251 = vmatmul.mubr.msk.f32.vlgmr.msra.gmra.mxu1 %vm115_vm0, %v1699_v20 }
 0xde9   :  { %v2252_v29 = vpop.f32.mrf.mxu1 }
 0xdea   :  { %v1791_v30 = vadd.f32 %v2252_v29, %v2005_v7 }
 0xdeb   :  { %v1785_v17 = vpop.f32.mrf.mxu1 }
 0xdec   :  { %v1786_v18 = vadd.f32 %v2005_v7, %v1785_v17  ;;  %v1795_v33 = vmax.f32 %v1791_v30, 0.0 }
 0xdee   :  { %v1794_v32 = vmax.f32 %v1786_v18, 0.0 }
 0xdf0   :  { %2269 = vmatprep.mubr.msk.f32.mxu0 %vm1811_vm8, %v1794_v32 }
 0xdf1   :  { %2270 = vmatmul.mubr.msk.f32.vlgmr.msra.gmra.mxu0 %vm1811_vm8, %v1795_v33 }
 0xeb1   :  { %v2271_v4 = vpop.f32.mrf.mxu0 }
 0xeb2   :  { %v1890_v26 = vadd.f32 %v2271_v4, %v2008_v1 }
 0xeb3   :  { %v1884_v15 = vpop.f32.mrf.mxu0 }
 0xeb4   :  { %v1885_v22 = vadd.f32 %v2008_v1, %v1884_v15  ;;  %v1894_v34 = vadd.f32 %v1890_v26, %v1699_v20 }
 0xeb6   :  { %v1900_v35 = vsel %vm115_vm0, %v1894_v34, 0.0  ;;  %v1893_v36 = vadd.f32 %v1885_v22, %v1698_v27 }
 0xeb7   :  { %1901 = vadd.xlane.f32.xlu0 %v1900_v35 }
 0xeb8   :  { %v1897_v37 = vsel %vm115_vm0, %v1893_v36, 0.0 }
 0xeb9   :  { %1898 = vadd.xlane.f32.xlu1 %v1897_v37 }
 0xf40   :  { %v1902_v38 = vpop.xlane.xlu0 %1901 }
 0xf41   :  { %v1904_v39 = vmul.f32 0.03125, %v1902_v38 }
 0xf42   :  { %v1899_v40 = vpop.xlane.xlu1 %1898 }
 0xf43   :  { %v1906_v41 = vsub.f32 %v1894_v34, %v1904_v39  ;;  %v1903_v42 = vmul.f32 0.03125, %v1899_v40 }
 0xf45   :  { %v1905_v43 = vsub.f32 %v1893_v36, %v1903_v42  ;;  %v1908_v44 = vmul.f32 %v1906_v41, %v1906_v41 }
 0xf47   :  { %v1912_v45 = vsel %vm115_vm0, %v1908_v44, 0.0  ;;  %v1907_v46 = vmul.f32 %v1905_v43, %v1905_v43 }
 0xf48   :  { %1913 = vadd.xlane.f32.xlu0 %v1912_v45 }
 0xf49   :  { %v1909_v47 = vsel %vm115_vm0, %v1907_v46, 0.0 }
 0xf4a   :  { %1910 = vadd.xlane.f32.xlu1 %v1909_v47 }
 0xfd1   :  { %v1914_v9 = vpop.xlane.xlu0 %1913 }
 0xfd2   :  { %v1916_v2 = vmul.f32 0.03125, %v1914_v9 }
 0xfd3   :  { %v1911_v48 = vpop.xlane.xlu1 %1910 }
 0xfd4   :  { %v1918_v49 = vadd.f32 1e-05, %v1916_v2  ;;  %v1915_v50 = vmul.f32 0.03125, %v1911_v48 }
 0xfd6   :  { %2356 = vrsqrt.f32 %v1918_v49  ;;  %v1917_v51 = vadd.f32 1e-05, %v1915_v50 }
 0xfd8   :  { %2358 = vrsqrt.f32 %v1917_v51 }
 0xfe3   :  { %v2357_v52 = vpop.eup %2356 }
 0xfe4   :  { %v1922_v54 = vmul.f32 %v2357_v52, %v1906_v41 }
 0xfe5   :  { %v2359_v19 = vpop.eup %2358 }
 0xfe6   :  { %v1921_v55 = vmul.f32 %v2359_v19, %v1905_v43  ;;  %v1930_v16 = vmul.f32 %v2011_v53, %v1922_v54 }
 0xfe8   :  { %v1929_v8 = vmul.f32 %v2011_v53, %v1921_v55  ;;  %v1938_v14 = vadd.f32 %v2012_v31, %v1930_v16 }
 0xfea   :  { %v1937_v0 = vadd.f32 %v2012_v31, %v1929_v8  ;;  %1940 = vst.msk [vmem:[#allocation5 + $0x8] sm:$0xff] %vm115_vm0, %v1938_v14 }
 0xfec   :  { %1939 = vst.msk [vmem:[#allocation5] sm:$0xff] %vm115_vm0, %v1937_v0 }
 0xfed   :  { %2391 = shalt.err (!%p2388_p9)
}
 0xfee   :  { %s3192_s24 = smov 128  }
 0xfef   :  { %1952 = dma.vmem_to_hbm [thread:$0]  %s1947_s28, 256, %s3157_s26, [#allocation4], %s3192_s24, %s3192_s24, %s2406_s9  }
 0xff0   :  { %2402 = dma.done.wait [#allocation4], 256  }
 0xff1   :  { %2403 = vsyncadd [#allocation4], 4294967040 }
 0xff2   :  { %1960 = vsyncpa [#allocation3], 1 }
 0xff3   :  { %1961 = vsyncpa [#allocation4], 1 }

</bundles_post_ra>
